<compile_context>
chip_gen: v5e
topology: v5e:2x2
jax: 0.10.0
libtpu: 0.0.40
codegen_flags: <defaults>
</compile_context>

<pallas_src>
import functools

import jax
import jax.numpy as jnp
from jax.experimental import pallas as pl
from jax.experimental.pallas import tpu as pltpu


def _round_up(x, m):
    return ((x + m - 1) // m) * m


def _am_softmax_ce_kernel(lb_ref, x_ref, w_ref, winv_ref, loss_ref,
                          xn_ref, m_ref, l_ref, t_ref,
                          *, margin, scale, num_classes, tc):
    ci = pl.program_id(1)        # class-tile index (reduction axis, innermost)
    nc = pl.num_programs(1)

    # ---- init per N-tile state; normalize x once and keep it resident in VMEM ----
    @pl.when(ci == 0)
    def _init():
        x = x_ref[...].astype(jnp.float32)                                    # (TN, E)
        inv = jax.lax.rsqrt(jnp.sum(x * x, axis=-1, keepdims=True) + 1e-12)
        xn_ref[...] = (x * inv).astype(xn_ref.dtype)                          # bf16
        m_ref[...] = jnp.full_like(m_ref, -jnp.inf)
        l_ref[...] = jnp.zeros_like(l_ref)
        t_ref[...] = jnp.zeros_like(t_ref)

    # ---- cosine for this class tile: bf16 x bf16 MXU matmul, f32 accumulate ----
    cos = jnp.dot(xn_ref[...], w_ref[...],
                  preferred_element_type=jnp.float32)                         # (TN, TC)
    cos = cos * winv_ref[...]        # post-matmul per-column 1/||W_col|| scaling

    # ---- AM-Softmax margin at the target class (iota compare, no one-hot tensor) ----
    labels = lb_ref[...]                                                      # (TN, 1)
    col = jax.lax.broadcasted_iota(jnp.int32, cos.shape, 1) + ci * tc
    is_target = col == labels
    logits = scale * jnp.where(is_target, cos - margin, cos)
    # Exclude padded class columns from the softmax.
    logits = jnp.where(col < num_classes, logits, -1e30)

    # Target logit lives in exactly one C tile -> masked lane-reduce accumulate.
    t_ref[...] += jnp.sum(jnp.where(is_target, logits, 0.0), axis=-1, keepdims=True)

    # ---- online log-sum-exp across C tiles ----
    m_prev = m_ref[...]
    m_new = jnp.maximum(m_prev, jnp.max(logits, axis=-1, keepdims=True))
    alpha = jnp.exp(m_prev - m_new)
    l_ref[...] = alpha * l_ref[...] + jnp.sum(jnp.exp(logits - m_new),
                                              axis=-1, keepdims=True)
    m_ref[...] = m_new

    # ---- finalize: per-sample cross entropy = logsumexp - target_logit ----
    @pl.when(ci == nc - 1)
    def _finalize():
        loss_ref[...] = m_ref[...] + jnp.log(l_ref[...]) - t_ref[...]


def am_softmax_loss(x, labels, weight, *, margin=0.35, scale=30.0,
                    tn=256, tc=1024):
    """x: (N, E), labels: (N,) int, weight: (E, C) -> scalar mean AM-Softmax CE loss."""
    n, e = x.shape
    e2, c = weight.shape
    assert e == e2

    n_pad = _round_up(n, tn)
    c_pad = _round_up(c, tc)

    x_p = jnp.pad(x.astype(jnp.float32), ((0, n_pad - n), (0, 0)))
    lb_p = jnp.pad(labels.astype(jnp.int32), (0, n_pad - n)).reshape(n_pad, 1)

    # Per-column inverse norms computed once in f32; W streamed to the kernel in bf16.
    w_f32 = weight.astype(jnp.float32)
    w_inv = jax.lax.rsqrt(jnp.sum(w_f32 * w_f32, axis=0, keepdims=True) + 1e-12)
    w_inv_p = jnp.pad(w_inv, ((0, 0), (0, c_pad - c)))
    w_bf16 = jnp.pad(weight.astype(jnp.bfloat16), ((0, 0), (0, c_pad - c)))

    grid = (n_pad // tn, c_pad // tc)

    per_sample = pl.pallas_call(
        functools.partial(_am_softmax_ce_kernel, margin=float(margin),
                          scale=float(scale), num_classes=c, tc=tc),
        out_shape=jax.ShapeDtypeStruct((n_pad, 1), jnp.float32),
        grid_spec=pltpu.PrefetchScalarGridSpec(
            num_scalar_prefetch=0,
            grid=grid,
            in_specs=[
                pl.BlockSpec((tn, 1), lambda i, k: (i, 0)),   # labels (per N tile)
                pl.BlockSpec((tn, e), lambda i, k: (i, 0)),   # features (resident over C)
                pl.BlockSpec((e, tc), lambda i, k: (0, k)),   # bf16 weight tile (streamed)
                pl.BlockSpec((1, tc), lambda i, k: (0, k)),   # per-column 1/norm
            ],
            out_specs=pl.BlockSpec((tn, 1), lambda i, k: (i, 0)),
            scratch_shapes=[
                pltpu.VMEM((tn, e), jnp.bfloat16),   # normalized x tile (reused over C)
                pltpu.VMEM((tn, 1), jnp.float32),    # running max
                pltpu.VMEM((tn, 1), jnp.float32),    # running sum-exp
                pltpu.VMEM((tn, 1), jnp.float32),    # target logit
            ],
        ),
        compiler_params=pltpu.CompilerParams(
            dimension_semantics=("parallel", "arbitrary")),
    )(lb_p, x_p, w_bf16, w_inv_p)

    # Mean over the real (non-padded) batch rows.
    return jnp.sum(per_sample[:n, 0]) / jnp.float32(n)


if __name__ == "__main__":
    # Small shapes consistent with the module: embedding_size=128, num_classes=512, batch 8.
    N, E, C = 8, 128, 512
    margin, scale = 0.35, 30.0

    key = jax.random.PRNGKey(0)
    kx, kw, kl = jax.random.split(key, 3)

    x = jax.random.normal(kx, (N, E), dtype=jnp.float32)
    labels = jax.random.randint(kl, (N,), 0, C, dtype=jnp.int32)

    # Deterministic Xavier-uniform init of the AMLinear weight (fan_in=E, fan_out=C).
    limit = jnp.sqrt(6.0 / (E + C)).astype(jnp.float32)
    weight = jax.random.uniform(kw, (E, C), dtype=jnp.float32,
                                minval=-limit, maxval=limit)

    # tn pads the tiny demo batch up to one MXU-friendly tile; tc=256 gives 2 class
    # tiles, exercising the online-softmax reduction across the C grid axis.
    loss = am_softmax_loss(x, labels, weight, margin=margin, scale=scale,
                           tn=128, tc=256)
    jax.block_until_ready(loss)

    # Pure-JAX f32 reference (kernel streams W / x_n in bf16, hence the loose tolerance).
    x_n = x / jnp.linalg.norm(x, axis=1, keepdims=True)
    w_n = weight / jnp.linalg.norm(weight, axis=0, keepdims=True)
    cos = jnp.dot(x_n, w_n, precision=jax.lax.Precision.HIGHEST)
    oh = jax.nn.one_hot(labels, C, dtype=jnp.float32)
    logits = scale * (cos - margin * oh)
    ref = jnp.mean(-jnp.sum(oh * jax.nn.log_softmax(logits, axis=-1), axis=-1))
    assert jnp.allclose(loss, ref, rtol=5e-2, atol=5e-2), (loss, ref)

    print("KERNEL_OK")
</pallas_src>

<mosaic_0001>
module attributes {stable_mosaic.version = 11 : i64} {
  func.func @_am_softmax_ce_kernel(%arg0: i32, %arg1: i32, %arg2: memref<128x1xi32, #tpu.memory_space<vmem>>, %arg3: memref<128x128xf32, #tpu.memory_space<vmem>>, %arg4: memref<128x256xbf16, #tpu.memory_space<vmem>>, %arg5: memref<1x256xf32, #tpu.memory_space<vmem>>, %arg6: memref<128x1xf32, #tpu.memory_space<vmem>>, %arg7: memref<128x128xbf16, #tpu.memory_space<vmem>>, %arg8: memref<128x1xf32, #tpu.memory_space<vmem>>, %arg9: memref<128x1xf32, #tpu.memory_space<vmem>>, %arg10: memref<128x1xf32, #tpu.memory_space<vmem>>) attributes {dimension_semantics = [#tpu.dimension_semantics<parallel>, #tpu.dimension_semantics<arbitrary>], iteration_bounds = array<i64: 1, 2>, scalar_prefetch = 0 : i64, scratch_operands = 4 : i64, tpu.core_type = #tpu.core_type<tc>, window_params = [{transform_indices = @transform_0, window_bounds = array<i64: 128, 1>}, {transform_indices = @transform_1, window_bounds = array<i64: 128, 128>}, {transform_indices = @transform_2, window_bounds = array<i64: 128, 256>}, {transform_indices = @transform_3, window_bounds = array<i64: 1, 256>}, {transform_indices = @transform_4, window_bounds = array<i64: 128, 1>}]} {
    %c0_i32 = arith.constant 0 : i32
    %0 = arith.cmpi eq, %arg1, %c0_i32 : i32
    %1 = arith.extui %0 : i1 to i32
    %c0_i32_0 = arith.constant 0 : i32
    %2 = arith.cmpi ne, %1, %c0_i32_0 : i32
    scf.if %2 {
      %c0_28 = arith.constant 0 : index
      %c0_29 = arith.constant 0 : index
      %51 = vector.load %arg3[%c0_28, %c0_29] : memref<128x128xf32, #tpu.memory_space<vmem>>, vector<128x128xf32>
      %52 = arith.mulf %51, %51 : vector<128x128xf32>
      %cst_30 = arith.constant dense<0.000000e+00> : vector<128xf32>
      %53 = vector.multi_reduction <add>, %52, %cst_30 [1] : vector<128x128xf32> to vector<128xf32>
      %54 = vector.shape_cast %53 : vector<128xf32> to vector<128x1xf32>
      %cst_31 = arith.constant 9.99999996E-13 : f32
      %55 = vector.broadcast %cst_31 : f32 to vector<128x1xf32>
      %56 = arith.addf %54, %55 : vector<128x1xf32>
      %57 = math.rsqrt %56 : vector<128x1xf32>
      %58 = vector.broadcast %57 : vector<128x1xf32> to vector<128x128xf32>
      %59 = arith.mulf %51, %58 : vector<128x128xf32>
      %60 = arith.truncf %59 : vector<128x128xf32> to vector<128x128xbf16>
      %c0_32 = arith.constant 0 : index
      %c0_33 = arith.constant 0 : index
      %61 = vector.load %arg7[%c0_32, %c0_33] : memref<128x128xbf16, #tpu.memory_space<vmem>>, vector<128x128xbf16>
      tpu.vector_store %arg7[%c0_32, %c0_33], %60 {strides = array<i32>} : memref<128x128xbf16, #tpu.memory_space<vmem>>, vector<128x128xbf16>,
      %cst_34 = arith.constant 0xFF800000 : f32
      %62 = vector.broadcast %cst_34 : f32 to vector<128x1xf32>
      %c0_35 = arith.constant 0 : index
      %c0_36 = arith.constant 0 : index
      %63 = vector.load %arg8[%c0_35, %c0_36] : memref<128x1xf32, #tpu.memory_space<vmem>>, vector<128x1xf32>
      tpu.vector_store %arg8[%c0_35, %c0_36], %62 {strides = array<i32>} : memref<128x1xf32, #tpu.memory_space<vmem>>, vector<128x1xf32>,
      %cst_37 = arith.constant 0.000000e+00 : f32
      %64 = vector.broadcast %cst_37 : f32 to vector<128x1xf32>
      %c0_38 = arith.constant 0 : index
      %c0_39 = arith.constant 0 : index
      %65 = vector.load %arg9[%c0_38, %c0_39] : memref<128x1xf32, #tpu.memory_space<vmem>>, vector<128x1xf32>
      tpu.vector_store %arg9[%c0_38, %c0_39], %64 {strides = array<i32>} : memref<128x1xf32, #tpu.memory_space<vmem>>, vector<128x1xf32>,
      %cst_40 = arith.constant 0.000000e+00 : f32
      %66 = vector.broadcast %cst_40 : f32 to vector<128x1xf32>
      %c0_41 = arith.constant 0 : index
      %c0_42 = arith.constant 0 : index
      %67 = vector.load %arg10[%c0_41, %c0_42] : memref<128x1xf32, #tpu.memory_space<vmem>>, vector<128x1xf32>
      tpu.vector_store %arg10[%c0_41, %c0_42], %66 {strides = array<i32>} : memref<128x1xf32, #tpu.memory_space<vmem>>, vector<128x1xf32>,
    } else {
    }
    %c0 = arith.constant 0 : index
    %c0_1 = arith.constant 0 : index
    %3 = vector.load %arg7[%c0, %c0_1] : memref<128x128xbf16, #tpu.memory_space<vmem>>, vector<128x128xbf16>
    %c0_2 = arith.constant 0 : index
    %c0_3 = arith.constant 0 : index
    %4 = vector.load %arg4[%c0_2, %c0_3] : memref<128x256xbf16, #tpu.memory_space<vmem>>, vector<128x256xbf16>
    %cst = arith.constant dense<0.000000e+00> : vector<128x256xf32>
    %5 = tpu.matmul %3, %4, %cst {dimension_numbers = #tpu.dot_dimension_numbers<[1], [0], [0], [1], [0, 0, 1, 1], [], []>} : vector<128x128xbf16>, vector<128x256xbf16>, vector<128x256xf32> -> vector<128x256xf32>
    %c0_4 = arith.constant 0 : index
    %c0_5 = arith.constant 0 : index
    %6 = vector.load %arg5[%c0_4, %c0_5] : memref<1x256xf32, #tpu.memory_space<vmem>>, vector<1x256xf32>
    %7 = vector.broadcast %6 : vector<1x256xf32> to vector<128x256xf32>
    %8 = arith.mulf %5, %7 : vector<128x256xf32>
    %c0_6 = arith.constant 0 : index
    %c0_7 = arith.constant 0 : index
    %9 = vector.load %arg2[%c0_6, %c0_7] : memref<128x1xi32, #tpu.memory_space<vmem>>, vector<128x1xi32>
    %10 = tpu.iota {dimensions = array<i32: 1>} : vector<128x256xi32>
    %c256_i32 = arith.constant 256 : i32
    %11 = arith.muli %arg1, %c256_i32 : i32
    %12 = vector.broadcast %11 : i32 to vector<128x256xi32>
    %13 = arith.addi %10, %12 : vector<128x256xi32>
    %14 = vector.broadcast %9 : vector<128x1xi32> to vector<128x256xi32>
    %15 = arith.cmpi eq, %13, %14 : vector<128x256xi32>
    %cst_8 = arith.constant 3.500000e-01 : f32
    %16 = vector.broadcast %cst_8 : f32 to vector<128x256xf32>
    %17 = arith.subf %8, %16 : vector<128x256xf32>
    %18 = arith.select %15, %17, %8 : vector<128x256xi1>, vector<128x256xf32>
    %cst_9 = arith.constant 3.000000e+01 : f32
    %19 = vector.broadcast %cst_9 : f32 to vector<128x256xf32>
    %20 = arith.mulf %19, %18 : vector<128x256xf32>
    %c512_i32 = arith.constant 512 : i32
    %21 = vector.broadcast %c512_i32 : i32 to vector<128x256xi32>
    %22 = arith.cmpi slt, %13, %21 : vector<128x256xi32>
    %cst_10 = arith.constant -1.000000e+30 : f32
    %23 = vector.broadcast %cst_10 : f32 to vector<128x256xf32>
    %24 = arith.select %22, %20, %23 : vector<128x256xi1>, vector<128x256xf32>
    %c0_11 = arith.constant 0 : index
    %c0_12 = arith.constant 0 : index
    %25 = vector.load %arg10[%c0_11, %c0_12] : memref<128x1xf32, #tpu.memory_space<vmem>>, vector<128x1xf32>
    %cst_13 = arith.constant 0.000000e+00 : f32
    %26 = vector.broadcast %cst_13 : f32 to vector<128x256xf32>
    %27 = arith.select %15, %24, %26 : vector<128x256xi1>, vector<128x256xf32>
    %cst_14 = arith.constant dense<0.000000e+00> : vector<128xf32>
    %28 = vector.multi_reduction <add>, %27, %cst_14 [1] : vector<128x256xf32> to vector<128xf32>
    %29 = vector.shape_cast %28 : vector<128xf32> to vector<128x1xf32>
    %30 = arith.addf %25, %29 : vector<128x1xf32>
    %c0_15 = arith.constant 0 : index
    %c0_16 = arith.constant 0 : index
    %31 = vector.load %arg10[%c0_15, %c0_16] : memref<128x1xf32, #tpu.memory_space<vmem>>, vector<128x1xf32>
    tpu.vector_store %arg10[%c0_15, %c0_16], %30 {strides = array<i32>} : memref<128x1xf32, #tpu.memory_space<vmem>>, vector<128x1xf32>,
    %c0_17 = arith.constant 0 : index
    %c0_18 = arith.constant 0 : index
    %32 = vector.load %arg8[%c0_17, %c0_18] : memref<128x1xf32, #tpu.memory_space<vmem>>, vector<128x1xf32>
    %cst_19 = arith.constant dense<0xFF800000> : vector<128xf32>
    %33 = vector.multi_reduction <maximumf>, %24, %cst_19 [1] : vector<128x256xf32> to vector<128xf32>
    %34 = vector.shape_cast %33 : vector<128xf32> to vector<128x1xf32>
    %35 = arith.maximumf %32, %34 : vector<128x1xf32>
    %36 = arith.subf %32, %35 : vector<128x1xf32>
    %37 = math.exp %36 : vector<128x1xf32>
    %c0_20 = arith.constant 0 : index
    %c0_21 = arith.constant 0 : index
    %38 = vector.load %arg9[%c0_20, %c0_21] : memref<128x1xf32, #tpu.memory_space<vmem>>, vector<128x1xf32>
    %39 = arith.mulf %37, %38 : vector<128x1xf32>
    %40 = vector.broadcast %35 : vector<128x1xf32> to vector<128x256xf32>
    %41 = arith.subf %24, %40 : vector<128x256xf32>
    %42 = math.exp %41 : vector<128x256xf32>
    %cst_22 = arith.constant dense<0.000000e+00> : vector<128xf32>
    %43 = vector.multi_reduction <add>, %42, %cst_22 [1] : vector<128x256xf32> to vector<128xf32>
    %44 = vector.shape_cast %43 : vector<128xf32> to vector<128x1xf32>
    %45 = arith.addf %39, %44 : vector<128x1xf32>
    %c0_23 = arith.constant 0 : index
    %c0_24 = arith.constant 0 : index
    %46 = vector.load %arg9[%c0_23, %c0_24] : memref<128x1xf32, #tpu.memory_space<vmem>>, vector<128x1xf32>
    tpu.vector_store %arg9[%c0_23, %c0_24], %45 {strides = array<i32>} : memref<128x1xf32, #tpu.memory_space<vmem>>, vector<128x1xf32>,
    %c0_25 = arith.constant 0 : index
    %c0_26 = arith.constant 0 : index
    %47 = vector.load %arg8[%c0_25, %c0_26] : memref<128x1xf32, #tpu.memory_space<vmem>>, vector<128x1xf32>
    tpu.vector_store %arg8[%c0_25, %c0_26], %35 {strides = array<i32>} : memref<128x1xf32, #tpu.memory_space<vmem>>, vector<128x1xf32>,
    %c1_i32 = arith.constant 1 : i32
    %48 = arith.cmpi eq, %arg1, %c1_i32 : i32
    %49 = arith.extui %48 : i1 to i32
    %c0_i32_27 = arith.constant 0 : i32
    %50 = arith.cmpi ne, %49, %c0_i32_27 : i32
    scf.if %50 {
      %c0_28 = arith.constant 0 : index
      %c0_29 = arith.constant 0 : index
      %51 = vector.load %arg8[%c0_28, %c0_29] : memref<128x1xf32, #tpu.memory_space<vmem>>, vector<128x1xf32>
      %c0_30 = arith.constant 0 : index
      %c0_31 = arith.constant 0 : index
      %52 = vector.load %arg9[%c0_30, %c0_31] : memref<128x1xf32, #tpu.memory_space<vmem>>, vector<128x1xf32>
      %53 = math.log %52 : vector<128x1xf32>
      %54 = arith.addf %51, %53 : vector<128x1xf32>
      %c0_32 = arith.constant 0 : index
      %c0_33 = arith.constant 0 : index
      %55 = vector.load %arg10[%c0_32, %c0_33] : memref<128x1xf32, #tpu.memory_space<vmem>>, vector<128x1xf32>
      %56 = arith.subf %54, %55 : vector<128x1xf32>
      %c0_34 = arith.constant 0 : index
      %c0_35 = arith.constant 0 : index
      %57 = vector.load %arg6[%c0_34, %c0_35] : memref<128x1xf32, #tpu.memory_space<vmem>>, vector<128x1xf32>
      tpu.vector_store %arg6[%c0_34, %c0_35], %56 {strides = array<i32>} : memref<128x1xf32, #tpu.memory_space<vmem>>, vector<128x1xf32>,
    } else {
    }
    return
  }
  func.func @transform_0(%arg0: i32, %arg1: i32) -> (i32, i32) {
    %c0_i32 = arith.constant 0 : i32
    %c0_i32_0 = arith.constant 0 : i32
    return %arg0, %c0_i32 : i32, i32
  }
  func.func @transform_1(%arg0: i32, %arg1: i32) -> (i32, i32) {
    %c0_i32 = arith.constant 0 : i32
    %c0_i32_0 = arith.constant 0 : i32
    return %arg0, %c0_i32 : i32, i32
  }
  func.func @transform_2(%arg0: i32, %arg1: i32) -> (i32, i32) {
    %c0_i32 = arith.constant 0 : i32
    %c0_i32_0 = arith.constant 0 : i32
    return %c0_i32, %arg1 : i32, i32
  }
  func.func @transform_3(%arg0: i32, %arg1: i32) -> (i32, i32) {
    %c0_i32 = arith.constant 0 : i32
    %c0_i32_0 = arith.constant 0 : i32
    return %c0_i32, %arg1 : i32, i32
  }
  func.func @transform_4(%arg0: i32, %arg1: i32) -> (i32, i32) {
    %c0_i32 = arith.constant 0 : i32
    %c0_i32_0 = arith.constant 0 : i32
    return %arg0, %c0_i32 : i32, i32
  }
}

</mosaic_0001>

<bundles_post_ra>
// kernel: tpu_custom_call.1
= control target key start
LH: loop header
LB: loop body
LE: loop exit
PB: predicated region body
PF: predicated region fallthrough
CT: control target
= control target key end

     0   :  { %9 = vsyncpa [#allocation7], 0  ;;  %s4042_s0 = inlined_call_operand.vmem [shape: s32[128,1], index: 0, kind: input, shape index: {}]   ;;  %s4043_s1 = inlined_call_operand.vmem [shape: f32[128,128], index: 1, kind: input, shape index: {}]   ;;  %s4044_s2 = inlined_call_operand.hbm [shape: bf16[128,512], index: 2, kind: input, shape index: {}]   ;;  %s4045_s3 = inlined_call_operand.hbm [shape: f32[1,512], index: 3, kind: input, shape index: {}]   ;;  %s4046_s4 = inlined_call_operand.vmem [shape: f32[128,1], index: 4, kind: output, shape index: {}]  }
   0x1   :  { %11 = vsyncpa [#allocation7 + $0x1], 0 }
   0x2   :  { %12 = vsyncpa [#allocation9], 0 }
   0x3   :  { %14 = vsyncpa [#allocation9 + $0x1], 0  ;;  %s2619_s15 = smov 0   ;;  %s2621_s16 = smov 0  }
   0x4   :  { %s2623_s17 = smov 0   ;;  %s2625_s18 = smov 0  }
   0x5   :  { %s2627_s19 = smov 0   ;;  %s2629_s20 = smov 0  }
   0x6 LB: > { %s2007_s21 = sadd.s32 4294967295, %s2586_s20   ;;  %s29_s22 = sadd.s32 1, %s2582_s19  ;;  %s2586_s20 = sphi %s2629_s20, %s20_s20   ;;  %s2582_s19 = sphi %s2627_s19, %s4122_s19   ;;  %s2578_s18 = sphi %s2625_s18, %s4121_s18   ;;  %s2574_s17 = sphi %s2623_s17, %s4120_s17   ;;  %s2570_s16 = sphi %s2621_s16, %s4119_s16   ;;  %s2566_s15 = sphi %s2619_s15, %s4118_s15  }
   0x7   : > { %p30_p0 = scmp.ge.s32.totalorder %s29_s22, 2  ;;  %s91_s23 = sadd.s32 1, %s2574_s17 }
   0x8   : > { %p98_p1 = scmp.ne.s32.totalorder %s2574_s17, %s2570_s16  ;;  %p99_p2 = scmp.eq.s32.totalorder %s2586_s20, 0 }
   0x9   : > { %s4124_s22 = smov (%p30_p0, %s29_s22), 0  ;;  %p104_p4 = scmp.ne.s32.totalorder %s2570_s16, %s2566_s15 }
   0xa   : > { %p2655_p3 = por %p99_p2, %p98_p1  ;;  %s88_s25 = ssub.s32 %s2582_s19, %s4124_s22 }
   0xb   : > { %p105_p5 = scmp.eq.s32.totalorder %s2007_s21, 0  ;;  %p89_p6 = scmp.eq.s32.totalorder %s88_s25, 0 }
   0xc   : > { %p2254_p8 = scmp.lt.s32.totalorder %s2586_s20, 2  ;;  %s2671_s28 = sand.u32 1, %s2574_s17  }
   0xd   : > { %p2662_p7 = por %p105_p5, %p104_p4  ;;  %s2155_s29 = sshll.u32 %s2582_s19, 3 }
   0xe   : > { %s2668_s27 = scalar_select %p89_p6, %s2574_s17, %s91_s23  }
   0xf   : > { %s2012_s30 = sshll.u32 %s2671_s28, 7  ;;  %s207_s7 = scalar_lea.hbm %s4044_s2, %s2155_s29 }
  0x10   : > { %s208_s8 = sshll.u32 %s207_s7, 4  ;;  %s202_s9 = scalar_lea.vmem [#allocation6], %s2012_s30  ;;  %s209_s8 = int_to_ptr.hbm [resolvable:$true] %s208_s8 }
  0x11   : > { %s210_s10 = sshll.u32 %s202_s9, 4  ;;  %p2680_p9 = pnand %p2254_p8, %p2655_p3  ;;  %s211_s10 = int_to_ptr.vmem [resolvable:$true] %s210_s10 }
  0x12   : > { %p2017_p10 = scmp.ge.s32.totalorder %s2586_s20, 1  ;;  %s199_s12 = scalar_lea.sflag [#allocation7], %s2671_s28 }
  0x13   : > { %s2588_s13 = smov 256   ;;  %s2589_s14 = smov 128  }
  0x14   : > { %s2590_s15 = smov 8   ;;  %p237_p11 = scmp.lt.s32.totalorder %s2586_s20, 3 }
  0x15   : > { %2250 = dma.hbm_to_vmem [thread:$0]  (!%p2680_p9), %s209_s8, 2048, %s211_s10, %s199_s12, %s2588_s13, %s2589_s14, %s2590_s15  }
  0x16   : > { %s2015_s21 = sshll.u32 %s2671_s28, 1  ;;  %s2016_s23 = sshll.u32 %s2582_s19, 1 }
  0x17   : > { %p238_p12 = pnand %p2017_p10, %p237_p11  ;;  %s228_s29 = scalar_lea.hbm %s4045_s3, %s2016_s23 }
  0x18   : > { %s224_s30 = scalar_lea.vmem [#allocation8], %s2015_s21  ;;  %s230_s6 = sshll.u32 %s228_s29, 4  ;;  %s231_s6 = int_to_ptr.hbm [resolvable:$true] %s230_s6 }
  0x19   : > { %s232_s5 = sshll.u32 %s224_s30, 4  ;;  %s221_s7 = scalar_lea.sflag [#allocation9], %s2671_s28  ;;  %s233_s5 = int_to_ptr.vmem [resolvable:$true] %s232_s5 }
  0x1a   : > { %2253 = dma.hbm_to_vmem [thread:$0]  (!%p2680_p9), %s231_s6, 32, %s233_s5, %s221_s7  }
  0x1b   : > { %241 = sbr.rel (%p238_p12) target bundleno = 912 (0x390), region = 36 }
  0x20   : > { %s243_s8 = sand.u32 1, %s2570_s16  }
  0x21   : > { %s2018_s9 = sshll.u32 %s243_s8, 7  ;;  %s244_s10 = scalar_lea.sflag [#allocation7], %s243_s8 }
  0x22   : > { %s2698_s12 = scalar_lea.vmem [#allocation6], %s2018_s9 }
  0x23   : > { %2557 = dma.done.wait (%p2662_p7), %s244_s10, 2048  }
  0x24   : > { %2559 = vsyncadd (%p2662_p7), %s244_s10, 4294965248  ;;  %s2019_s13 = sshll.u32 %s243_s8, 1  ;;  %s254_s14 = scalar_lea.sflag [#allocation9], %s243_s8 }
  0x25   : > { %s2704_s15 = scalar_lea.vmem [#allocation8], %s2019_s13 }
  0x26   : > { %2561 = dma.done.wait (%p2662_p7), %s254_s14, 32  }
  0x27   : > { %2563 = vsyncadd (%p2662_p7), %s254_s14, 4294967264  ;;  %p2020_p13 = scmp.ne.s32.totalorder %s2578_s18, 0 }
  0x29   : > { %321 = sbr.rel (%p2020_p13) target bundleno = 264 (0x108), region = 48 }
  0x2e   : > { %v2714_v0 = vld [vmem:[%s4043_s1 + $0x20] sm:$0xff]  ;;  %v2719_v1 = vld [vmem:[%s4043_s1 + $0x10] sm:$0xff]  ;;  %v2735_v6 = vld [vmem:[%s4043_s1 + $0x28] sm:$0xff] }
  0x2f   : > { %v2724_v2 = vld [vmem:[%s4043_s1] sm:$0xff]  ;;  %v342_v3 = vmul.f32 %v2714_v0, %v2714_v0  ;;  %v340_v4 = vmul.f32 %v2719_v1, %v2719_v1  ;;  %v2740_v7 = vld [vmem:[%s4043_s1 + $0x18] sm:$0xff]  ;;  %v2745_v8 = vld [vmem:[%s4043_s1 + $0x8] sm:$0xff]  ;;  %v343_v9 = vmul.f32 %v2735_v6, %v2735_v6 }
  0x30   : > { %v338_v5 = vmul.f32 %v2724_v2, %v2724_v2  ;;  %v341_v10 = vmul.f32 %v2740_v7, %v2740_v7  ;;  %v339_v11 = vmul.f32 %v2745_v8, %v2745_v8  ;;  %v2756_v12 = vld [vmem:[%s4043_s1 + $0x40] sm:$0xff]  ;;  %v2761_v13 = vld [vmem:[%s4043_s1 + $0x38] sm:$0xff]  ;;  %v2766_v14 = vld [vmem:[%s4043_s1 + $0x30] sm:$0xff] }
  0x31   : > { %362 = vadd.xlane.f32.xlu2 %v342_v3  ;;  %358 = vadd.xlane.f32.xlu1 %v340_v4  ;;  %v346_v15 = vmul.f32 %v2756_v12, %v2756_v12  ;;  %v345_v16 = vmul.f32 %v2761_v13, %v2761_v13  ;;  %v344_v17 = vmul.f32 %v2766_v14, %v2766_v14  ;;  %v2777_v18 = vld [vmem:[%s4043_s1 + $0x58] sm:$0xff]  ;;  %v2782_v19 = vld [vmem:[%s4043_s1 + $0x50] sm:$0xff]  ;;  %v2787_v20 = vld [vmem:[%s4043_s1 + $0x48] sm:$0xff] }
  0x32   : > { %354 = vadd.xlane.f32.xlu0 %v338_v5  ;;  %v349_v21 = vmul.f32 %v2777_v18, %v2777_v18  ;;  %v348_v22 = vmul.f32 %v2782_v19, %v2782_v19  ;;  %v347_v23 = vmul.f32 %v2787_v20, %v2787_v20  ;;  %v2798_v24 = vld [vmem:[%s4043_s1 + $0x70] sm:$0xff]  ;;  %v2803_v25 = vld [vmem:[%s4043_s1 + $0x68] sm:$0xff]  ;;  %v2808_v26 = vld [vmem:[%s4043_s1 + $0x60] sm:$0xff] }
  0x33   : > { %v352_v27 = vmul.f32 %v2798_v24, %v2798_v24  ;;  %v351_v28 = vmul.f32 %v2803_v25, %v2803_v25  ;;  %v350_v29 = vmul.f32 %v2808_v26, %v2808_v26  ;;  %v2819_v30 = vld [vmem:[%s4043_s1 + $0x78] sm:$0xff] }
  0x34   : > { %v353_v31 = vmul.f32 %v2819_v30, %v2819_v30 }
  0x39   : > { %364 = vadd.xlane.f32.xlu2 %v343_v9  ;;  %360 = vadd.xlane.f32.xlu1 %v341_v10 }
  0x3a   : > { %356 = vadd.xlane.f32.xlu0 %v339_v11 }
  0x41   : > { %370 = vadd.xlane.f32.xlu2 %v346_v15  ;;  %368 = vadd.xlane.f32.xlu1 %v345_v16 }
  0x42   : > { %366 = vadd.xlane.f32.xlu0 %v344_v17 }
  0x49   : > { %376 = vadd.xlane.f32.xlu2 %v349_v21  ;;  %374 = vadd.xlane.f32.xlu1 %v348_v22 }
  0x4a   : > { %372 = vadd.xlane.f32.xlu0 %v347_v23 }
  0x51   : > { %382 = vadd.xlane.f32.xlu2 %v352_v27  ;;  %380 = vadd.xlane.f32.xlu1 %v351_v28 }
  0x52   : > { %378 = vadd.xlane.f32.xlu0 %v350_v29 }
  0x5a   : > { %384 = vadd.xlane.f32.xlu0 %v353_v31 }
  0xa4   : > { %v363_v32 = vpop.xlane.xlu2 %362  ;;  %v359_v33 = vpop.xlane.xlu1 %358 }
  0xa5   : > { %v390_v34 = vadd.f32 1e-12, %v363_v32  ;;  %v2823_v35 = vadd.f32 1e-12, %v359_v33  ;;  %v355_v36 = vpop.xlane.xlu0 %354 }
  0xa6   : > { %v2825_v37 = vadd.f32 1e-12, %v355_v36 }
  0xa7   : > { %2309 = vrsqrt.f32 %v390_v34  ;;  %vm448_vm0 = vweird.f32 %v390_v34  ;;  %vm428_vm1 = vweird.f32 %v2823_v35 }
  0xa8   : > { %2311 = vrsqrt.f32 %v2823_v35  ;;  %vm408_vm3 = vweird.f32 %v2825_v37 }
  0xa9   : > { %2313 = vrsqrt.f32 %v2825_v37 }
  0xac   : > { %v365_v38 = vpop.xlane.xlu2 %364  ;;  %v361_v39 = vpop.xlane.xlu1 %360 }
  0xad   : > { %v2829_v40 = vpop.eup %2309  ;;  %v2831_v41 = vadd.f32 1e-12, %v365_v38  ;;  %v2833_v42 = vadd.f32 1e-12, %v361_v39  ;;  %v357_v43 = vpop.xlane.xlu0 %356 }
  0xae   : > { %v2835_v44 = vpop.eup %2311  ;;  %v443_v45 = vmul.f32 %v2829_v40, %v390_v34  ;;  %v2838_v46 = vadd.f32 1e-12, %v357_v43  ;;  %vm449_vm2 = vweird.f32 %v2829_v40 }
  0xaf   : > { %v2840_v47 = vpop.eup %2313  ;;  %v423_v48 = vmul.f32 %v2835_v44, %v2823_v35  ;;  %2315 = vrsqrt.f32 %v2831_v41  ;;  %vm429_vm4 = vweird.f32 %v2835_v44  ;;  %vm458_vm5 = vweird.f32 %v2831_v41  ;;  %vm2884_vm10 = vmor %vm448_vm0, %vm449_vm2 }
  0xb0   : > { %v444_v49 = vmul.f32 %v2829_v40, %v443_v45  ;;  %v403_v50 = vmul.f32 %v2840_v47, %v2825_v37  ;;  %2317 = vrsqrt.f32 %v2833_v42  ;;  %vm409_vm6 = vweird.f32 %v2840_v47  ;;  %vm2900_vm12 = vmor %vm428_vm1, %vm429_vm4 }
  0xb1   : > { %v424_v51 = vmul.f32 %v2835_v44, %v423_v48  ;;  %2319 = vrsqrt.f32 %v2838_v46  ;;  %vm438_vm7 = vweird.f32 %v2833_v42  ;;  %vm418_vm8 = vweird.f32 %v2838_v46  ;;  %vm2915_vm13 = vmor %vm408_vm3, %vm409_vm6 }
  0xb2   : > { %v445_v52 = vmul.f32 0.5, %v444_v49  ;;  %v404_v53 = vmul.f32 %v2840_v47, %v403_v50 }
  0xb3   : > { %v425_v54 = vmul.f32 0.5, %v424_v51 }
  0xb4   : > { %v405_v55 = vmul.f32 0.5, %v404_v53  ;;  %v371_v56 = vpop.xlane.xlu2 %370  ;;  %v369_v57 = vpop.xlane.xlu1 %368  ;;  %v446_v59 = vsub.f32 1.5, %v445_v52 }
  0xb5   : > { %v2852_v58 = vpop.eup %2315  ;;  %v2855_v60 = vadd.f32 1e-12, %v371_v56  ;;  %v367_v61 = vpop.xlane.xlu0 %366  ;;  %v426_v63 = vsub.f32 1.5, %v425_v54  ;;  %v2866_v10 = vadd.f32 1e-12, %v369_v57 }
  0xb6   : > { %v2857_v62 = vpop.eup %2317  ;;  %v453_v3 = vmul.f32 %v2852_v58, %v2831_v41  ;;  %v406_v5 = vsub.f32 1.5, %v405_v55  ;;  %v447_v16 = vmul.f32 %v2829_v40, %v446_v59  ;;  %vm459_vm9 = vweird.f32 %v2852_v58 }
  0xb7   : > { %v2320_v4 = vpop.eup %2319  ;;  %v433_v9 = vmul.f32 %v2857_v62, %v2833_v42  ;;  %2321 = vrsqrt.f32 %v2855_v60  ;;  %v427_v21 = vmul.f32 %v2835_v44, %v426_v63  ;;  %vm439_vm11 = vweird.f32 %v2857_v62  ;;  %vm460_vm15 = vmor %vm458_vm5, %vm459_vm9 }
  0xb8   : > { %v454_v11 = vmul.f32 %v2852_v58, %v453_v3  ;;  %v413_v15 = vmul.f32 %v2320_v4, %v2838_v46  ;;  %v407_v27 = vmul.f32 %v2840_v47, %v406_v5  ;;  %2323 = vrsqrt.f32 %v2866_v10  ;;  %vm440_vm0 = vmor %vm438_vm7, %vm439_vm11 }
  0xb9   : > { %v434_v17 = vmul.f32 %v2857_v62, %v433_v9  ;;  %v2889_v33 = vadd.f32 1e-12, %v367_v61  ;;  %v451_v43 = vsel %vm2884_vm10, %v2829_v40, %v447_v16  ;;  %v431_v51 = vsel %vm2900_vm12, %v2835_v44, %v427_v21 }
  0xba   : > { %v455_v22 = vmul.f32 0.5, %v454_v11  ;;  %v414_v23 = vmul.f32 %v2320_v4, %v413_v15  ;;  %vm419_vm14 = vweird.f32 %v2320_v4  ;;  %v411_v53 = vsel %vm2915_vm13, %v2840_v47, %v407_v27 }
  0xbb   : > { %v435_v28 = vmul.f32 0.5, %v434_v17  ;;  %2325 = vrsqrt.f32 %v2889_v33  ;;  %v566_v54 = vmul.f32 %v451_v43, %v2714_v0  ;;  %v564_v56 = vmul.f32 %v431_v51, %v2719_v1  ;;  %vm420_vm1 = vmor %vm418_vm8, %vm419_vm14 }
  0xbc   : > { %v456_v31 = vsub.f32 1.5, %v455_v22  ;;  %v415_v32 = vmul.f32 0.5, %v414_v23  ;;  %v377_v36 = vpop.xlane.xlu2 %376  ;;  %v375_v38 = vpop.xlane.xlu1 %374  ;;  %v562_v0 = vmul.f32 %v411_v53, %v2724_v2  ;;  %vm478_vm2 = vweird.f32 %v2866_v10 }
  0xbd   : > { %v2891_v39 = vpop.eup %2321  ;;  %v436_v45 = vsub.f32 1.5, %v435_v28  ;;  %v2904_v48 = vadd.f32 1e-12, %v377_v36  ;;  %v2906_v49 = vadd.f32 1e-12, %v375_v38  ;;  %v373_v50 = vpop.xlane.xlu0 %372  ;;  %vm468_vm3 = vweird.f32 %v2889_v33 }
  0xbe   : > { %v457_v40 = vmul.f32 %v2852_v58, %v456_v31  ;;  %v416_v52 = vsub.f32 1.5, %v415_v32  ;;  %v483_v37 = vmul.f32 %v2891_v39, %v2855_v60  ;;  %v2938_v41 = vpop.eup %2323  ;;  %vm488_vm4 = vweird.f32 %v2855_v60 }
  0xbf   : > { %v437_v44 = vmul.f32 %v2857_v62, %v436_v45  ;;  %2327 = vrsqrt.f32 %v2904_v48  ;;  %v473_v61 = vmul.f32 %v2938_v41, %v2866_v10  ;;  %vm489_vm5 = vweird.f32 %v2891_v39 }
  0xc0   : > { %v461_v55 = vsel %vm460_vm15, %v2852_v58, %v457_v40  ;;  %v417_v47 = vmul.f32 %v2320_v4, %v416_v52  ;;  %2329 = vrsqrt.f32 %v2906_v49  ;;  %vm479_vm6 = vweird.f32 %v2938_v41 }
  0xc1   : > { %v567_v57 = vmul.f32 %v461_v55, %v2735_v6  ;;  %v441_v59 = vsel %vm440_vm0, %v2857_v62, %v437_v44  ;;  %v484_v6 = vmul.f32 %v2891_v39, %v483_v37  ;;  %v2953_v62 = vadd.f32 1e-12, %v373_v50  ;;  %v2956_v9 = vpop.eup %2325  ;;  %vm2989_vm9 = vmor %vm478_vm2, %vm479_vm6 }
  0xc2   : > { %v565_v42 = vmul.f32 %v441_v59, %v2740_v7  ;;  %v421_v58 = vsel %vm420_vm1, %v2320_v4, %v417_v47  ;;  %v474_v46 = vmul.f32 %v2938_v41, %v473_v61  ;;  %v463_v15 = vmul.f32 %v2956_v9, %v2889_v33  ;;  %vm3035_vm2 = vmor %vm488_vm4, %vm489_vm5 }
  0xc3   : > { %v2193_v63 = vpack.c.bf16 %v567_v57, %v566_v54  ;;  %v563_v1 = vmul.f32 %v421_v58, %v2745_v8  ;;  %2331 = vrsqrt.f32 %v2953_v62  ;;  %v485_v21 = vmul.f32 0.5, %v484_v6 }
  0xc4   : > { %v2188_v3 = vpack.c.bf16 %v565_v42, %v564_v56  ;;  %v383_v5 = vpop.xlane.xlu2 %382  ;;  %v475_v8 = vmul.f32 0.5, %v474_v46  ;;  %v381_v16 = vpop.xlane.xlu1 %380  ;;  %v464_v27 = vmul.f32 %v2956_v9, %v463_v15  ;;  %vm518_vm7 = vweird.f32 %v2904_v48 }
  0xc5   : > { %2221 = vst [vmem:[#allocation2 + $0x18] sm:$0xff] %v2193_v63   ;;  %v2183_v2 = vpack.c.bf16 %v563_v1, %v562_v0  ;;  %v2959_v7 = vadd.f32 1e-12, %v383_v5  ;;  %v379_v4 = vpop.xlane.xlu0 %378  ;;  %v2961_v11 = vpop.eup %2327  ;;  %vm508_vm8 = vweird.f32 %v2906_v49  ;;  %v2981_v31 = vadd.f32 1e-12, %v381_v16 }
  0xc6   : > { %2220 = vst [vmem:[#allocation2] sm:$0xff] %v2188_v3   ;;  %v2966_v17 = vpop.eup %2329  ;;  %v513_v22 = vmul.f32 %v2961_v11, %v2904_v48  ;;  %v476_v23 = vsub.f32 1.5, %v475_v8  ;;  %v465_v36 = vmul.f32 0.5, %v464_v27  ;;  %v2985_v43 = vadd.f32 1e-12, %v379_v4 }
  0xc7   : > { %2184 = vst [vmem:[#allocation2 + $0x30] sm:$0xff] %v2183_v2   ;;  %2333 = vrsqrt.f32 %v2959_v7  ;;  %v503_v28 = vmul.f32 %v2966_v17, %v2906_v49  ;;  %v486_v45 = vsub.f32 1.5, %v485_v21  ;;  %vm469_vm10 = vweird.f32 %v2956_v9 }
  0xc8   : > { %v514_v29 = vmul.f32 %v2961_v11, %v513_v22  ;;  %v477_v32 = vmul.f32 %v2938_v41, %v476_v23  ;;  %2335 = vrsqrt.f32 %v2981_v31  ;;  %v466_v40 = vsub.f32 1.5, %v465_v36  ;;  %vm470_vm13 = vmor %vm468_vm3, %vm469_vm10 }
  0xc9   : > { %v504_v38 = vmul.f32 %v2966_v17, %v503_v28  ;;  %v2332_v34 = vpop.eup %2331  ;;  %vm519_vm11 = vweird.f32 %v2961_v11  ;;  %vm509_vm12 = vweird.f32 %v2966_v17  ;;  %2337 = vrsqrt.f32 %v2985_v43 }
  0xca   : > { %v515_v51 = vmul.f32 0.5, %v514_v29  ;;  %v481_v35 = vsel %vm2989_vm9, %v2938_v41, %v477_v32  ;;  %v493_v53 = vmul.f32 %v2332_v34, %v2953_v62  ;;  %v467_v54 = vmul.f32 %v2956_v9, %v466_v40  ;;  %vm520_vm14 = vmor %vm518_vm7, %vm519_vm11 }
  0xcb   : > { %v505_v52 = vmul.f32 0.5, %v504_v38  ;;  %v487_v56 = vmul.f32 %v2891_v39, %v486_v45  ;;  %v569_v57 = vmul.f32 %v481_v35, %v2761_v13  ;;  %vm510_vm15 = vmor %vm508_vm8, %vm509_vm12  ;;  %vm498_vm0 = vweird.f32 %v2953_v62 }
  0xcc   : > { %v516_v10 = vsub.f32 1.5, %v515_v51  ;;  %v494_v47 = vmul.f32 %v2332_v34, %v493_v53  ;;  %v471_v42 = vsel %vm470_vm13, %v2956_v9, %v467_v54  ;;  %vm499_vm1 = vweird.f32 %v2332_v34 }
  0xcd   : > { %v2999_v44 = vpop.eup %2333  ;;  %v385_v37 = vpop.xlane.xlu0 %384  ;;  %v506_v55 = vsub.f32 1.5, %v505_v52  ;;  %v568_v1 = vmul.f32 %v471_v42, %v2766_v14  ;;  %vm610_vm3 = vcmask 7168   ;;  %vm500_vm4 = vmor %vm498_vm0, %vm499_vm1  ;;  %vm538_vm5 = vweird.f32 %v2981_v31 }
  0xce   : > { %v543_v41 = vmul.f32 %v2999_v44, %v2959_v7  ;;  %v517_v59 = vmul.f32 %v2961_v11, %v516_v10  ;;  %v3014_v0 = vadd.f32 1e-12, %v385_v37  ;;  %v495_v61 = vmul.f32 0.5, %v494_v47  ;;  %v2336_v13 = vpop.eup %2335 }
  0xcf   : > { %v507_v58 = vmul.f32 %v2966_v17, %v506_v55  ;;  %v2338_v46 = vpop.eup %2337  ;;  %v2198_v49 = vpack.c.bf16 %v569_v57, %v568_v1  ;;  %v533_v9 = vmul.f32 %v2336_v13, %v2981_v31  ;;  %vm539_vm6 = vweird.f32 %v2336_v13 }
  0xd0   : > { %v544_v63 = vmul.f32 %v2999_v44, %v543_v41  ;;  %v521_v33 = vsel %vm520_vm14, %v2961_v11, %v517_v59  ;;  %2339 = vrsqrt.f32 %v3014_v0  ;;  %v496_v3 = vsub.f32 1.5, %v495_v61  ;;  %vm540_vm10 = vmor %vm538_vm5, %vm539_vm6 }
  0xd1   : > { %v573_v48 = vmul.f32 %v521_v33, %v2777_v18  ;;  %v511_v6 = vsel %vm510_vm15, %v2966_v17, %v507_v58  ;;  %v491_v18 = vsel %vm3035_vm2, %v2891_v39, %v487_v56  ;;  %v523_v11 = vmul.f32 %v2338_v46, %v2985_v43  ;;  %2222 = vst [vmem:[#allocation2 + $0x10] sm:$0xff] %v2198_v49  }
  0xd2   : > { %v572_v5 = vmul.f32 %v511_v6, %v2782_v19  ;;  %v497_v2 = vmul.f32 %v2332_v34, %v496_v3  ;;  %v545_v4 = vmul.f32 0.5, %v544_v63  ;;  %v534_v8 = vmul.f32 %v2336_v13, %v533_v9 }
  0xd3   : > { %v524_v16 = vmul.f32 %v2338_v46, %v523_v11  ;;  %v2591_v19 = vmov -inf   ;;  %v570_v21 = vmul.f32 %v491_v18, %v2756_v12  ;;  %vm529_vm7 = vweird.f32 %v2338_v46 }
  0xd4   : > { %v2208_v60 = vpack.c.bf16 %v573_v48, %v572_v5  ;;  %v501_v15 = vsel %vm500_vm4, %v2332_v34, %v497_v2  ;;  %611 = vst.msk [vmem:[#allocation3] sm:$0xff] %vm610_vm3, %v2591_v19  ;;  %v535_v22 = vmul.f32 0.5, %v534_v8  ;;  %v546_v23 = vsub.f32 1.5, %v545_v4 }
  0xd5   : > { %v571_v39 = vmul.f32 %v501_v15, %v2787_v20  ;;  %v525_v27 = vmul.f32 0.5, %v524_v16  ;;  %612 = vst.msk [vmem:[#allocation3 + $0x8] sm:$0xff] %vm610_vm3, %v2591_v19  ;;  %vm548_vm8 = vweird.f32 %v2959_v7  ;;  %vm549_vm9 = vweird.f32 %v2999_v44 }
  0xd6   : > { %v2340_v17 = vpop.eup %2339  ;;  %2224 = vst [vmem:[#allocation2 + $0x20] sm:$0xff] %v2208_v60   ;;  %v536_v29 = vsub.f32 1.5, %v535_v22  ;;  %v547_v36 = vmul.f32 %v2999_v44, %v546_v23  ;;  %vm528_vm11 = vweird.f32 %v2985_v43  ;;  %vm550_vm14 = vmor %vm548_vm8, %vm549_vm9  ;;  %vm558_vm15 = vweird.f32 %v3014_v0 }
  0xd7   : > { %v553_v28 = vmul.f32 %v2340_v17, %v3014_v0  ;;  %v2203_v62 = vpack.c.bf16 %v571_v39, %v570_v21  ;;  %613 = vst.msk [vmem:[#allocation3 + $0x10] sm:$0xff] %vm610_vm3, %v2591_v19  ;;  %v526_v32 = vsub.f32 1.5, %v525_v27  ;;  %vm530_vm12 = vmor %vm528_vm11, %vm529_vm7  ;;  %vm559_vm13 = vweird.f32 %v2340_v17 }
  0xd8   : > { %614 = vst.msk [vmem:[#allocation3 + $0x18] sm:$0xff] %vm610_vm3, %v2591_v19  ;;  %v537_v20 = vmul.f32 %v2336_v13, %v536_v29  ;;  %v551_v35 = vsel %vm550_vm14, %v2999_v44, %v547_v36  ;;  %vm560_vm0 = vmor %vm558_vm15, %vm559_vm13  ;;  %v2592_v44 = vmov 0.0  }
  0xd9   : > { %v554_v12 = vmul.f32 %v2340_v17, %v553_v28  ;;  %2223 = vst [vmem:[#allocation2 + $0x8] sm:$0xff] %v2203_v62   ;;  %v527_v38 = vmul.f32 %v2338_v46, %v526_v32  ;;  %v576_v7 = vmul.f32 %v551_v35, %v2798_v24 }
  0xda   : > { %615 = vst.msk [vmem:[#allocation3 + $0x20] sm:$0xff] %vm610_vm3, %v2591_v19  ;;  %v541_v34 = vsel %vm540_vm10, %v2336_v13, %v537_v20 }
  0xdb   : > { %v555_v31 = vmul.f32 0.5, %v554_v12  ;;  %616 = vst.msk [vmem:[#allocation3 + $0x28] sm:$0xff] %vm610_vm3, %v2591_v19  ;;  %v575_v45 = vmul.f32 %v541_v34, %v2803_v25  ;;  %v531_v50 = vsel %vm530_vm12, %v2338_v46, %v527_v38 }
  0xdc   : > { %617 = vst.msk [vmem:[#allocation3 + $0x30] sm:$0xff] %vm610_vm3, %v2591_v19  ;;  %v574_v43 = vmul.f32 %v531_v50, %v2808_v26 }
  0xdd   : > { %v556_v51 = vsub.f32 1.5, %v555_v31  ;;  %618 = vst.msk [vmem:[#allocation3 + $0x38] sm:$0xff] %vm610_vm3, %v2591_v19 }
  0xde   : > { %619 = vst.msk [vmem:[#allocation3 + $0x40] sm:$0xff] %vm610_vm3, %v2591_v19  ;;  %v2213_v25 = vpack.c.bf16 %v575_v45, %v574_v43 }
  0xdf   : > { %v557_v40 = vmul.f32 %v2340_v17, %v556_v51  ;;  %620 = vst.msk [vmem:[#allocation3 + $0x48] sm:$0xff] %vm610_vm3, %v2591_v19 }
  0xe0   : > { %621 = vst.msk [vmem:[#allocation3 + $0x50] sm:$0xff] %vm610_vm3, %v2591_v19 }
  0xe1   : > { %v561_v52 = vsel %vm560_vm0, %v2340_v17, %v557_v40  ;;  %2225 = vst [vmem:[#allocation2 + $0x28] sm:$0xff] %v2213_v25  }
  0xe2   : > { %v577_v26 = vmul.f32 %v561_v52, %v2819_v30  ;;  %622 = vst.msk [vmem:[#allocation3 + $0x58] sm:$0xff] %vm610_vm3, %v2591_v19 }
  0xe3   : > { %623 = vst.msk [vmem:[#allocation3 + $0x60] sm:$0xff] %vm610_vm3, %v2591_v19 }
  0xe4   : > { %v2218_v53 = vpack.c.bf16 %v577_v26, %v576_v7  ;;  %624 = vst.msk [vmem:[#allocation3 + $0x68] sm:$0xff] %vm610_vm3, %v2591_v19 }
  0xe5   : > { %625 = vst.msk [vmem:[#allocation3 + $0x70] sm:$0xff] %vm610_vm3, %v2591_v19 }
  0xe6   : > { %2226 = vst [vmem:[#allocation2 + $0x38] sm:$0xff] %v2218_v53  }
  0xe7   : > { %626 = vst.msk [vmem:[#allocation3 + $0x78] sm:$0xff] %vm610_vm3, %v2591_v19 }
  0xe8   : > { %627 = vst.msk [vmem:[#allocation4] sm:$0xff] %vm610_vm3, %v2592_v44 }
  0xe9   : > { %628 = vst.msk [vmem:[#allocation4 + $0x8] sm:$0xff] %vm610_vm3, %v2592_v44 }
  0xea   : > { %629 = vst.msk [vmem:[#allocation4 + $0x10] sm:$0xff] %vm610_vm3, %v2592_v44 }
  0xeb   : > { %630 = vst.msk [vmem:[#allocation4 + $0x18] sm:$0xff] %vm610_vm3, %v2592_v44 }
  0xec   : > { %631 = vst.msk [vmem:[#allocation4 + $0x20] sm:$0xff] %vm610_vm3, %v2592_v44 }
  0xed   : > { %632 = vst.msk [vmem:[#allocation4 + $0x28] sm:$0xff] %vm610_vm3, %v2592_v44 }
  0xee   : > { %633 = vst.msk [vmem:[#allocation4 + $0x30] sm:$0xff] %vm610_vm3, %v2592_v44 }
  0xef   : > { %634 = vst.msk [vmem:[#allocation4 + $0x38] sm:$0xff] %vm610_vm3, %v2592_v44 }
  0xf0   : > { %635 = vst.msk [vmem:[#allocation4 + $0x40] sm:$0xff] %vm610_vm3, %v2592_v44 }
  0xf1   : > { %636 = vst.msk [vmem:[#allocation4 + $0x48] sm:$0xff] %vm610_vm3, %v2592_v44 }
  0xf2   : > { %637 = vst.msk [vmem:[#allocation4 + $0x50] sm:$0xff] %vm610_vm3, %v2592_v44 }
  0xf3   : > { %638 = vst.msk [vmem:[#allocation4 + $0x58] sm:$0xff] %vm610_vm3, %v2592_v44 }
  0xf4   : > { %639 = vst.msk [vmem:[#allocation4 + $0x60] sm:$0xff] %vm610_vm3, %v2592_v44 }
  0xf5   : > { %640 = vst.msk [vmem:[#allocation4 + $0x68] sm:$0xff] %vm610_vm3, %v2592_v44 }
  0xf6   : > { %641 = vst.msk [vmem:[#allocation4 + $0x70] sm:$0xff] %vm610_vm3, %v2592_v44 }
  0xf7   : > { %642 = vst.msk [vmem:[#allocation4 + $0x78] sm:$0xff] %vm610_vm3, %v2592_v44 }
  0xf8   : > { %643 = vst.msk [vmem:[#allocation5] sm:$0xff] %vm610_vm3, %v2592_v44 }
  0xf9   : > { %644 = vst.msk [vmem:[#allocation5 + $0x8] sm:$0xff] %vm610_vm3, %v2592_v44 }
  0xfa   : > { %645 = vst.msk [vmem:[#allocation5 + $0x10] sm:$0xff] %vm610_vm3, %v2592_v44 }
  0xfb   : > { %646 = vst.msk [vmem:[#allocation5 + $0x18] sm:$0xff] %vm610_vm3, %v2592_v44 }
  0xfc   : > { %647 = vst.msk [vmem:[#allocation5 + $0x20] sm:$0xff] %vm610_vm3, %v2592_v44 }
  0xfd   : > { %648 = vst.msk [vmem:[#allocation5 + $0x28] sm:$0xff] %vm610_vm3, %v2592_v44 }
  0xfe   : > { %649 = vst.msk [vmem:[#allocation5 + $0x30] sm:$0xff] %vm610_vm3, %v2592_v44 }
  0xff   : > { %650 = vst.msk [vmem:[#allocation5 + $0x38] sm:$0xff] %vm610_vm3, %v2592_v44 }
 0x100   : > { %651 = vst.msk [vmem:[#allocation5 + $0x40] sm:$0xff] %vm610_vm3, %v2592_v44 }
 0x101   : > { %652 = vst.msk [vmem:[#allocation5 + $0x48] sm:$0xff] %vm610_vm3, %v2592_v44 }
 0x102   : > { %653 = vst.msk [vmem:[#allocation5 + $0x50] sm:$0xff] %vm610_vm3, %v2592_v44 }
 0x103   : > { %654 = vst.msk [vmem:[#allocation5 + $0x58] sm:$0xff] %vm610_vm3, %v2592_v44 }
 0x104   : > { %655 = vst.msk [vmem:[#allocation5 + $0x60] sm:$0xff] %vm610_vm3, %v2592_v44 }
 0x105   : > { %656 = vst.msk [vmem:[#allocation5 + $0x68] sm:$0xff] %vm610_vm3, %v2592_v44 }
 0x106   : > { %657 = vst.msk [vmem:[#allocation5 + $0x70] sm:$0xff] %vm610_vm3, %v2592_v44 }
 0x107   : > { %658 = vst.msk [vmem:[#allocation5 + $0x78] sm:$0xff] %vm610_vm3, %v2592_v44 }
 0x108 PF: > { %v955_v24 = vld [vmem:[%s4042_s0] sm:$0xff]  ;;  %v2111_v30 = vld [vmem:[%s2698_s12 + $0x70] sm:$0xf]  ;;  %v2179_v10 = vld [vmem:[%s2698_s12 + $0x74] sm:$0xf0]  ;;  %v2593_v37 = vmov 0  }
 0x109   : > { %2341 = vset.pattern.permute.xlu0 %v2593_v37  ;;  %v2112_v54 = vor.u32 %v2179_v10, %v2111_v30  ;;  %v2178_v55 = vld [vmem:[%s2698_s12 + $0x74] sm:$0xf]  ;;  %v2113_v47 = vld [vmem:[%s2698_s12 + $0x78] sm:$0xf0]  ;;  %v2103_v41 = vld [vmem:[%s2698_s12 + $0x60] sm:$0xf]  ;;  %2342 = vset.pattern.permute.xlu1 %v2593_v37 }
 0x10a   : > { %979 = vperm.xlu0 %2341, %v955_v24   ;;  %v2116_v56 = vor.u32 %v2178_v55, %v2113_v47  ;;  %v2177_v57 = vld [vmem:[%s2698_s12 + $0x64] sm:$0xf0]  ;;  %v2176_v59 = vld [vmem:[%s2698_s12 + $0x64] sm:$0xf]  ;;  %v2105_v0 = vld [vmem:[%s2698_s12 + $0x68] sm:$0xf0]  ;;  %2343 = vset.pattern.permute.xlu2 %v2593_v37 }
 0x10b   : > { %819 = vmatpush.bf16.msra.mxu0 %v2112_v54  ;;  %2227 = vmatpush.bf16.msra.mxu2 %v2112_v54  ;;  %v2104_v42 = vor.u32 %v2177_v57, %v2103_v41  ;;  %v2108_v58 = vor.u32 %v2176_v59, %v2105_v0  ;;  %v2095_v61 = vld [vmem:[%s2698_s12 + $0x50] sm:$0xf]  ;;  %v2175_v63 = vld [vmem:[%s2698_s12 + $0x54] sm:$0xf0]  ;;  %v2174_v1 = vld [vmem:[%s2698_s12 + $0x54] sm:$0xf]  ;;  %v971_v59 = vlaneseq }
 0x10c   : > { %868 = vmatpush.bf16.msra.mxu1 %v2116_v56  ;;  %2235 = vmatpush.bf16.msra.mxu3 %v2116_v56  ;;  %v957_v13 = vld [vmem:[%s4042_s0 + $0x10] sm:$0xff]  ;;  %v2097_v33 = vld [vmem:[%s2698_s12 + $0x58] sm:$0xf0]  ;;  %v956_v48 = vld [vmem:[%s4042_s0 + $0x8] sm:$0xff]  ;;  %v2096_v6 = vor.u32 %v2175_v63, %v2095_v61  ;;  %s2117_s8 = sshll.u32 %s2578_s18, 8  ;;  %p2150_p0 = scmp.ne.s32.totalorder %s2578_s18, 1 }
 0x10d   : > { %985 = vperm.xlu1 %2342, %v957_v13   ;;  %v2100_v3 = vor.u32 %v2174_v1, %v2097_v33  ;;  %v2087_v46 = vld [vmem:[%s2698_s12 + $0x40] sm:$0xf]  ;;  %v2173_v14 = vld [vmem:[%s2698_s12 + $0x44] sm:$0xf0]  ;;  %v2172_v49 = vld [vmem:[%s2698_s12 + $0x44] sm:$0xf]  ;;  %v975_v1 = vstv %s2117_s8 }
 0x10e   : > { %v2089_v5 = vld [vmem:[%s2698_s12 + $0x48] sm:$0xf0]  ;;  %v958_v9 = vld [vmem:[%s4042_s0 + $0x18] sm:$0xff]  ;;  %v2088_v18 = vor.u32 %v2173_v14, %v2087_v46  ;;  %v2079_v4 = vld [vmem:[%s2698_s12 + $0x30] sm:$0xf] }
 0x10f   : > { %820 = vmatpush.bf16.msra.mxu0 %v2104_v42  ;;  %2228 = vmatpush.bf16.msra.mxu2 %v2104_v42  ;;  %v2092_v2 = vor.u32 %v2172_v49, %v2089_v5  ;;  %v2171_v11 = vld [vmem:[%s2698_s12 + $0x34] sm:$0xf0]  ;;  %v2170_v60 = vld [vmem:[%s2698_s12 + $0x34] sm:$0xf]  ;;  %v2081_v8 = vld [vmem:[%s2698_s12 + $0x38] sm:$0xf0] }
 0x110   : > { %869 = vmatpush.bf16.msra.mxu1 %v2108_v58  ;;  %2236 = vmatpush.bf16.msra.mxu3 %v2108_v58  ;;  %v959_v15 = vld [vmem:[%s4042_s0 + $0x20] sm:$0xff]  ;;  %v961_v16 = vld [vmem:[%s4042_s0 + $0x30] sm:$0xff]  ;;  %v2080_v19 = vor.u32 %v2171_v11, %v2079_v4  ;;  %v2084_v17 = vor.u32 %v2170_v60, %v2081_v8  ;;  %v2169_v39 = vld [vmem:[%s2698_s12 + $0x24] sm:$0xf0]  ;;  %v972_v42 = vand.u32 127, %v971_v59 }
 0x111   : > { %v2071_v21 = vld [vmem:[%s2698_s12 + $0x20] sm:$0xf]  ;;  %v2168_v22 = vld [vmem:[%s2698_s12 + $0x24] sm:$0xf]  ;;  %v2073_v23 = vld [vmem:[%s2698_s12 + $0x28] sm:$0xf0]  ;;  %991 = vperm.xlu2 %2343, %v959_v15  }
 0x112   : > { %982 = vperm.xlu0 %2341, %v956_v48   ;;  %v962_v27 = vld [vmem:[%s4042_s0 + $0x38] sm:$0xff]  ;;  %v2072_v28 = vor.u32 %v2169_v39, %v2071_v21  ;;  %v2076_v62 = vor.u32 %v2168_v22, %v2073_v23  ;;  %v2063_v29 = vld [vmem:[%s2698_s12 + $0x10] sm:$0xf]  ;;  %v2166_v12 = vld [vmem:[%s2698_s12 + $0x14] sm:$0xf]  ;;  %v973_v13 = vadd.s32 128, %v972_v42 }
 0x113   : > { %821 = vmatpush.bf16.msra.mxu0 %v2096_v6  ;;  %2229 = vmatpush.bf16.msra.mxu2 %v2096_v6  ;;  %v2167_v32 = vld [vmem:[%s2698_s12 + $0x14] sm:$0xf0]  ;;  %v2065_v20 = vld [vmem:[%s2698_s12 + $0x18] sm:$0xf0]  ;;  %v960_v36 = vld [vmem:[%s4042_s0 + $0x28] sm:$0xff]  ;;  %v3207_v6 = vadd.s32 %v975_v1, %v972_v42 }
 0x114   : > { %870 = vmatpush.bf16.msra.mxu1 %v2100_v3  ;;  %2237 = vmatpush.bf16.msra.mxu3 %v2100_v3  ;;  %v964_v38 = vld [vmem:[%s4042_s0 + $0x48] sm:$0xff]  ;;  %v2064_v31 = vor.u32 %v2167_v32, %v2063_v29  ;;  %v2068_v34 = vor.u32 %v2166_v12, %v2065_v20  ;;  %v2055_v45 = vld [vmem:[%s2698_s12] sm:$0xf]  ;;  %v2164_v51 = vld [vmem:[%s2698_s12 + $0x4] sm:$0xf]  ;;  %v3211_v14 = vadd.s32 %v975_v1, %v973_v13 }
 0x115   : > { %988 = vperm.xlu1 %2342, %v958_v9   ;;  %v2165_v50 = vld [vmem:[%s2698_s12 + $0x4] sm:$0xf0]  ;;  %v2057_v43 = vld [vmem:[%s2698_s12 + $0x8] sm:$0xf0]  ;;  %v965_v35 = vld [vmem:[%s4042_s0 + $0x50] sm:$0xff]  ;;  %vm1154_vm3 = vcmp.lt.s32.totalorder %v3207_v6, 512 }
 0x116   : > { %v2056_v40 = vor.u32 %v2165_v50, %v2055_v45  ;;  %v2060_v25 = vor.u32 %v2164_v51, %v2057_v43  ;;  %v2156_v52 = vld [vmem:[#allocation2 + $0x30] sm:$0xff]  ;;  %v963_v7 = vld [vmem:[%s4042_s0 + $0x40] sm:$0xff]  ;;  %v2160_v53 = vld [vmem:[#allocation2 + $0x8] sm:$0xff]  ;;  %vm1155_vm4 = vcmp.lt.s32.totalorder %v3211_v14, 512 }
 0x117   : > { %822 = vmatpush.bf16.msra.mxu0 %v2088_v18  ;;  %2230 = vmatpush.bf16.msra.mxu2 %v2088_v18  ;;  %v967_v26 = vld [vmem:[%s4042_s0 + $0x60] sm:$0xff]  ;;  %v968_v44 = vld [vmem:[%s4042_s0 + $0x68] sm:$0xff]  ;;  %v966_v24 = vld [vmem:[%s4042_s0 + $0x58] sm:$0xff] }
 0x118   : > { %871 = vmatpush.bf16.msra.mxu1 %v2092_v2  ;;  %2238 = vmatpush.bf16.msra.mxu3 %v2092_v2  ;;  %v970_v30 = vld [vmem:[%s4042_s0 + $0x78] sm:$0xff]  ;;  %v2157_v10 = vld [vmem:[#allocation2] sm:$0xff]  ;;  %v969_v37 = vld [vmem:[%s4042_s0 + $0x70] sm:$0xff] }
 0x119   : > { %994 = vperm.xlu2 %2343, %v960_v36   ;;  %v2161_v54 = vld [vmem:[#allocation2 + $0x20] sm:$0xff]  ;;  %v2158_v55 = vld [vmem:[#allocation2 + $0x18] sm:$0xff]  ;;  %v2162_v47 = vld [vmem:[#allocation2 + $0x28] sm:$0xff] }
 0x11a   : > { %997 = vperm.xlu0 %2341, %v961_v16   ;;  %v2159_v41 = vld [vmem:[#allocation2 + $0x10] sm:$0xff]  ;;  %v2163_v56 = vld [vmem:[#allocation2 + $0x38] sm:$0xff]  ;;  %v917_v63 = vld [vmem:[%s2704_s15] sm:$0x3] }
 0x11b   : > { %823 = vmatpush.bf16.msra.mxu0 %v2080_v19  ;;  %2231 = vmatpush.bf16.msra.mxu2 %v2080_v19  ;;  %v3203_v33 = vperm.slane %v917_v63, 0  ;;  %v3205_v48 = vperm.slane %v917_v63, 1 }
 0x11c   : > { %872 = vmatpush.bf16.msra.mxu1 %v2084_v17  ;;  %2239 = vmatpush.bf16.msra.mxu3 %v2084_v17 }
 0x11d   : > { %1000 = vperm.xlu1 %2342, %v962_v27  }
 0x11f   : > { %824 = vmatpush.bf16.msra.mxu0 %v2072_v28  ;;  %2232 = vmatpush.bf16.msra.mxu2 %v2072_v28 }
 0x120   : > { %873 = vmatpush.bf16.msra.mxu1 %v2076_v62  ;;  %2240 = vmatpush.bf16.msra.mxu3 %v2076_v62 }
 0x121   : > { %1003 = vperm.xlu2 %2343, %v963_v7  }
 0x122   : > { %1006 = vperm.xlu0 %2341, %v964_v38  }
 0x123   : > { %825 = vmatpush.bf16.msra.mxu0 %v2064_v31  ;;  %2233 = vmatpush.bf16.msra.mxu2 %v2064_v31 }
 0x124   : > { %874 = vmatpush.bf16.msra.mxu1 %v2068_v34  ;;  %2241 = vmatpush.bf16.msra.mxu3 %v2068_v34 }
 0x125   : > { %1009 = vperm.xlu1 %2342, %v965_v35  }
 0x127   : > { %826 = vmatpush.bf16.msra.mxu0 %v2056_v40  ;;  %2234 = vmatpush.bf16.msra.mxu2 %v2056_v40 }
 0x128   : > { %875 = vmatpush.bf16.msra.mxu1 %v2060_v25  ;;  %2242 = vmatpush.bf16.msra.mxu3 %v2060_v25 }
 0x129   : > { %1012 = vperm.xlu2 %2343, %v966_v24  }
 0x12a   : > { %1015 = vperm.xlu0 %2341, %v967_v26   ;;  %827 = vmatmul.bf16.vlgmr.msra.gmra.mxu0 %v2156_v52 }
 0x12b   : > { %847 = vmatmul.bf16.vlgmr.msra.gmra.mxu2 %v2160_v53  ;;  %876 = vmatmul.bf16.vlgmr.msra.gmra.mxu1 %v2156_v52 }
 0x12c   : > { %896 = vmatmul.bf16.vlgmr.msra.gmra.mxu3 %v2160_v53 }
 0x12d   : > { %1018 = vperm.xlu1 %2342, %v968_v44  }
 0x131   : > { %1021 = vperm.xlu2 %2343, %v969_v37  }
 0x132   : > { %1024 = vperm.xlu0 %2341, %v970_v30  }
 0x13a   : > { %832 = vmatmul.bf16.gmra.mxu0 %v2157_v10 }
 0x13b   : > { %852 = vmatmul.bf16.gmra.mxu2 %v2161_v54  ;;  %881 = vmatmul.bf16.gmra.mxu1 %v2157_v10 }
 0x13c   : > { %901 = vmatmul.bf16.gmra.mxu3 %v2161_v54 }
 0x14a   : > { %837 = vmatmul.bf16.gmra.mxu0 %v2158_v55 }
 0x14b   : > { %857 = vmatmul.bf16.gmra.mxu2 %v2162_v47  ;;  %886 = vmatmul.bf16.gmra.mxu1 %v2158_v55 }
 0x14c   : > { %906 = vmatmul.bf16.gmra.mxu3 %v2162_v47 }
 0x15a   : > { %842 = vmatmul.bf16.gmra.mxu0 %v2159_v41 }
 0x15b   : > { %862 = vmatmul.bf16.gmra.mxu2 %v2163_v56  ;;  %891 = vmatmul.bf16.gmra.mxu1 %v2159_v41 }
 0x15c   : > { %911 = vmatmul.bf16.gmra.mxu3 %v2163_v56 }
 0x16b   : > { %v3195_v0 = vpop.permute.xlu2 %991 }
 0x173   : > { %v3209_v3 = vpop.permute.xlu2 %994 }
 0x17b   : > { %v1004_v29 = vpop.permute.xlu2 %1003 }
 0x17c   : > { %v3193_v57 = vpop.permute.xlu0 %979  ;;  %vm1042_vm5 = vcmp.eq.s32.totalorder %v3207_v6, %v1004_v29  ;;  %vm1043_vm6 = vcmp.eq.s32.totalorder %v3211_v14, %v1004_v29 }
 0x17d   : > { %vm1026_vm1 = vcmp.eq.s32.totalorder %v3207_v6, %v3193_v57  ;;  %vm1027_vm2 = vcmp.eq.s32.totalorder %v3211_v14, %v3193_v57 }
 0x17f   : > { %v3199_v61 = vpop.permute.xlu1 %985 }
 0x180   : > { %vm1030_vm11 = vcmp.eq.s32.totalorder %v3207_v6, %v3199_v61  ;;  %vm1031_vm12 = vcmp.eq.s32.totalorder %v3211_v14, %v3199_v61 }
 0x184   : > { %v3197_v58 = vpop.permute.xlu0 %982 }
 0x185   : > { %vm1028_vm7 = vcmp.eq.s32.totalorder %v3207_v6, %v3197_v58  ;;  %vm1029_vm8 = vcmp.eq.s32.totalorder %v3211_v14, %v3197_v58 }
 0x187   : > { %v3217_v2 = vpop.permute.xlu1 %988 }
 0x188   : > { %vm1032_vm15 = vcmp.eq.s32.totalorder %v3207_v6, %v3217_v2  ;;  %vm1033_vm0 = vcmp.eq.s32.totalorder %v3211_v14, %v3217_v2 }
 0x18c   : > { %v3215_v18 = vpop.permute.xlu0 %997 }
 0x18f   : > { %v3249_v50 = vpop.permute.xlu1 %1000 }
 0x194   : > { %v1007_v45 = vpop.permute.xlu0 %1006 }
 0x195   : > { %vm1044_vm9 = vcmp.eq.s32.totalorder %v3207_v6, %v1007_v45  ;;  %vm1045_vm10 = vcmp.eq.s32.totalorder %v3211_v14, %v1007_v45 }
 0x1a7   : > { %v828_v46 = vpop.f32.mrf.mxu0 }
 0x1a8   : > { %v923_v49 = vmul.f32 %v3203_v33, %v828_v46  ;;  %v877_v5 = vpop.f32.mrf.mxu1 }
 0x1a9   : > { %v924_v9 = vmul.f32 %v3205_v48, %v877_v5 }
 0x1aa   : > { %v2118_v4 = vadd.f32 -0.35, %v923_v49 }
 0x1ab   : > { %v2119_v11 = vadd.f32 -0.35, %v924_v9 }
 0x1ac   : > { %v1090_v60 = vsel %vm1026_vm1, %v2118_v4, %v923_v49 }
 0x1ad   : > { %v1122_v8 = vmul.f32 30.0, %v1090_v60  ;;  %v1091_v15 = vsel %vm1027_vm2, %v2119_v11, %v924_v9 }
 0x1ae   : > { %v1123_v16 = vmul.f32 30.0, %v1091_v15  ;;  %v848_v19 = vpop.f32.mrf.mxu2 }
 0x1af   : > { %v939_v17 = vmul.f32 %v3203_v33, %v848_v19  ;;  %v897_v21 = vpop.f32.mrf.mxu3  ;;  %v830_v39 = vpop.f32.mrf.mxu0  ;;  %v3234_v22 = vsel %vm1154_vm3, %v1122_v8, -1e+30 }
 0x1b0   : > { %v940_v23 = vmul.f32 %v3205_v48, %v897_v21  ;;  %v925_v27 = vmul.f32 %v3203_v33, %v830_v39  ;;  %v879_v28 = vpop.f32.mrf.mxu1  ;;  %v3240_v62 = vsel %vm1155_vm4, %v1123_v16, -1e+30  ;;  %v1204_v7 = vsel %vm1026_vm1, %v3234_v22, 0.0  ;;  %v1010_v8 = vpop.permute.xlu1 %1009 }
 0x1b1   : > { %v2134_v32 = vadd.f32 -0.35, %v939_v17  ;;  %v926_v12 = vmul.f32 %v3205_v48, %v879_v28  ;;  %v1333_v20 = vmax.f32 %v3234_v22, %v3240_v62  ;;  %v1205_v26 = vsel %vm1027_vm2, %v3240_v62, 0.0 }
 0x1b2   : > { %v2135_v36 = vadd.f32 -0.35, %v940_v23  ;;  %v2120_v38 = vadd.f32 -0.35, %v925_v27  ;;  %v1236_v63 = vadd.f32 %v1205_v26, %v1204_v7  ;;  %vm1046_vm13 = vcmp.eq.s32.totalorder %v3207_v6, %v1010_v8 }
 0x1b3   : > { %v1106_v31 = vsel %vm1042_vm5, %v2134_v32, %v939_v17  ;;  %v2121_v34 = vadd.f32 -0.35, %v926_v12  ;;  %1334 = vmax.xlane.f32.xlu1 %v1333_v20  ;;  %vm1047_vm14 = vcmp.eq.s32.totalorder %v3211_v14, %v1010_v8  ;;  %vm1034_vm1 = vcmp.eq.s32.totalorder %v3207_v6, %v3195_v0  ;;  %v3393_v8 = vpop.permute.xlu2 %1012 }
 0x1b4   : > { %v1138_v51 = vmul.f32 30.0, %v1106_v31  ;;  %v1107_v43 = vsel %vm1043_vm6, %v2135_v36, %v940_v23  ;;  %v1092_v40 = vsel %vm1028_vm7, %v2120_v38, %v925_v27  ;;  %vm1035_vm2 = vcmp.eq.s32.totalorder %v3211_v14, %v3195_v0 }
 0x1b5   : > { %v1139_v35 = vmul.f32 30.0, %v1107_v43  ;;  %v1093_v53 = vsel %vm1029_vm8, %v2121_v34, %v926_v12  ;;  %v1124_v13 = vmul.f32 30.0, %v1092_v40 }
 0x1b6   : > { %v850_v25 = vpop.f32.mrf.mxu2  ;;  %v3263_v52 = vsel %vm1154_vm3, %v1138_v51, -1e+30  ;;  %v1125_v1 = vmul.f32 30.0, %v1093_v53 }
 0x1b7   : > { %v941_v44 = vmul.f32 %v3203_v33, %v850_v25  ;;  %v899_v24 = vpop.f32.mrf.mxu3  ;;  %v833_v30 = vpop.f32.mrf.mxu0  ;;  %v3279_v10 = vsel %vm1155_vm4, %v1139_v35, -1e+30  ;;  %v1220_v37 = vsel %vm1042_vm5, %v3263_v52, 0.0  ;;  %v3310_v17 = vsel %vm1154_vm3, %v1124_v13, -1e+30 }
 0x1b8   : > { %v942_v54 = vmul.f32 %v3205_v48, %v899_v24  ;;  %v927_v55 = vmul.f32 %v3203_v33, %v833_v30  ;;  %v882_v47 = vpop.f32.mrf.mxu1  ;;  %v1357_v41 = vmax.f32 %v3263_v52, %v3279_v10  ;;  %v1221_v56 = vsel %vm1043_vm6, %v3279_v10, 0.0 }
 0x1b9   : > { %v2136_v57 = vadd.f32 -0.35, %v941_v44  ;;  %v928_v59 = vmul.f32 %v3205_v48, %v882_v47  ;;  %v1260_v42 = vadd.f32 %v1221_v56, %v1220_v37  ;;  %v3314_v21 = vsel %vm1155_vm4, %v1125_v1, -1e+30 }
 0x1ba   : > { %v2137_v46 = vadd.f32 -0.35, %v942_v54  ;;  %v2122_v49 = vadd.f32 -0.35, %v927_v55  ;;  %1358 = vmax.xlane.f32.xlu0 %v1357_v41  ;;  %v1336_v43 = vmax.f32 %v3310_v17, %v3314_v21  ;;  %v1206_v37 = vsel %vm1028_vm7, %v3310_v17, 0.0 }
 0x1bb   : > { %v1108_v5 = vsel %vm1044_vm9, %v2136_v57, %v941_v44  ;;  %v2123_v9 = vadd.f32 -0.35, %v928_v59  ;;  %1261 = vadd.xlane.f32.xlu2 %v1260_v42  ;;  %1237 = vadd.xlane.f32.xlu1 %v1236_v63  ;;  %vm1048_vm5 = vcmp.eq.s32.totalorder %v3207_v6, %v3393_v8  ;;  %vm1049_vm6 = vcmp.eq.s32.totalorder %v3211_v14, %v3393_v8 }
 0x1bc   : > { %v1140_v4 = vmul.f32 30.0, %v1108_v5  ;;  %v1109_v11 = vsel %vm1045_vm10, %v2137_v46, %v942_v54  ;;  %v1094_v15 = vsel %vm1030_vm11, %v2122_v49, %v927_v55  ;;  %v1207_v54 = vsel %vm1029_vm8, %v3314_v21, 0.0 }
 0x1bd   : > { %v1141_v60 = vmul.f32 30.0, %v1109_v11  ;;  %v1095_v39 = vsel %vm1031_vm12, %v2123_v9, %v928_v59  ;;  %v1126_v35 = vmul.f32 30.0, %v1094_v15  ;;  %v1239_v11 = vadd.f32 %v1207_v54, %v1206_v37 }
 0x1be   : > { %v853_v16 = vpop.f32.mrf.mxu2  ;;  %v3306_v19 = vsel %vm1154_vm3, %v1140_v4, -1e+30  ;;  %v1127_v40 = vmul.f32 30.0, %v1095_v39  ;;  %vm1036_vm8 = vcmp.eq.s32.totalorder %v3207_v6, %v3209_v3 }
 0x1bf   : > { %v943_v23 = vmul.f32 %v3203_v33, %v853_v16  ;;  %v902_v27 = vpop.f32.mrf.mxu3  ;;  %v835_v28 = vpop.f32.mrf.mxu0  ;;  %v3322_v29 = vsel %vm1155_vm4, %v1141_v60, -1e+30  ;;  %v1222_v32 = vsel %vm1044_vm9, %v3306_v19, 0.0  ;;  %v3357_v47 = vsel %vm1154_vm3, %v1126_v35, -1e+30 }
 0x1c0   : > { %v944_v12 = vmul.f32 %v3205_v48, %v902_v27  ;;  %v929_v20 = vmul.f32 %v3203_v33, %v835_v28  ;;  %v884_v36 = vpop.f32.mrf.mxu1  ;;  %v1223_v38 = vsel %vm1045_vm10, %v3322_v29, 0.0  ;;  %v1360_v7 = vmax.f32 %v3306_v19, %v3322_v29 }
 0x1c1   : > { %v2138_v31 = vadd.f32 -0.35, %v943_v23  ;;  %v930_v34 = vmul.f32 %v3205_v48, %v884_v36  ;;  %v1263_v51 = vadd.f32 %v1223_v38, %v1222_v32  ;;  %v3361_v41 = vsel %vm1155_vm4, %v1127_v40, -1e+30  ;;  %v3403_v36 = vpop.permute.xlu0 %1015 }
 0x1c2   : > { %v2139_v25 = vadd.f32 -0.35, %v944_v12  ;;  %v2124_v45 = vadd.f32 -0.35, %v929_v20  ;;  %v1339_v60 = vmax.f32 %v3357_v47, %v3361_v41  ;;  %vm1050_vm7 = vcmp.eq.s32.totalorder %v3207_v6, %v3403_v36 }
 0x1c3   : > { %v1110_v26 = vsel %vm1046_vm13, %v2138_v31, %v943_v23  ;;  %1264 = vadd.xlane.f32.xlu0 %v1263_v51  ;;  %1337 = vmax.xlane.f32.xlu2 %v1336_v43  ;;  %v2125_v24 = vadd.f32 -0.35, %v930_v34  ;;  %v1209_v51 = vsel %vm1031_vm12, %v3361_v41, 0.0  ;;  %vm1051_vm9 = vcmp.eq.s32.totalorder %v3211_v14, %v3403_v36 }
 0x1c4   : > { %v1142_v53 = vmul.f32 30.0, %v1110_v26  ;;  %v1111_v44 = vsel %vm1047_vm14, %v2139_v25, %v944_v12  ;;  %1361 = vmax.xlane.f32.xlu1 %v1360_v7  ;;  %v1096_v58 = vsel %vm1032_vm15, %v2124_v45, %v929_v20  ;;  %vm1038_vm10 = vcmp.eq.s32.totalorder %v3207_v6, %v3215_v18 }
 0x1c5   : > { %v1143_v30 = vmul.f32 30.0, %v1111_v44  ;;  %v1097_v1 = vsel %vm1033_vm0, %v2125_v24, %v930_v34  ;;  %v1128_v23 = vmul.f32 30.0, %v1096_v58  ;;  %v1208_v34 = vsel %vm1030_vm11, %v3357_v47, 0.0 }
 0x1c6   : > { %v855_v55 = vpop.f32.mrf.mxu2  ;;  %v3365_v56 = vsel %vm1154_vm3, %v1142_v53, -1e+30  ;;  %v1129_v27 = vmul.f32 30.0, %v1097_v1  ;;  %v1242_v54 = vadd.f32 %v1209_v51, %v1208_v34  ;;  %vm1037_vm11 = vcmp.eq.s32.totalorder %v3211_v14, %v3209_v3 }
 0x1c7   : > { %v945_v57 = vmul.f32 %v3203_v33, %v855_v55  ;;  %v904_v59 = vpop.f32.mrf.mxu3  ;;  %v838_v42 = vpop.f32.mrf.mxu0  ;;  %v3373_v63 = vsel %vm1155_vm4, %v1143_v30, -1e+30  ;;  %v1224_v13 = vsel %vm1046_vm13, %v3365_v56, 0.0  ;;  %v3424_v7 = vsel %vm1154_vm3, %v1128_v23, -1e+30 }
 0x1c8   : > { %v946_v46 = vmul.f32 %v3205_v48, %v904_v59  ;;  %v931_v49 = vmul.f32 %v3203_v33, %v838_v42  ;;  %v887_v5 = vpop.f32.mrf.mxu1  ;;  %v1225_v9 = vsel %vm1047_vm14, %v3373_v63, 0.0  ;;  %v3428_v26 = vsel %vm1155_vm4, %v1129_v27, -1e+30  ;;  %v3439_v55 = vpop.permute.xlu1 %1018 }
 0x1c9   : > { %v932_v4 = vmul.f32 %v3205_v48, %v887_v5  ;;  %v1266_v15 = vadd.f32 %v1225_v9, %v1224_v13  ;;  %v2140_v16 = vadd.f32 -0.35, %v945_v57  ;;  %v1363_v37 = vmax.f32 %v3365_v56, %v3373_v63 }
 0x1ca   : > { %v2126_v39 = vadd.f32 -0.35, %v931_v49  ;;  %v2141_v28 = vadd.f32 -0.35, %v946_v46  ;;  %v1342_v59 = vmax.f32 %v3424_v7, %v3428_v26  ;;  %v1210_v1 = vsel %vm1032_vm15, %v3424_v7, 0.0 }
 0x1cb   : > { %v2127_v32 = vadd.f32 -0.35, %v932_v4  ;;  %1240 = vadd.xlane.f32.xlu2 %v1239_v11  ;;  %1340 = vmax.xlane.f32.xlu0 %v1339_v60  ;;  %v1112_v38 = vsel %vm1048_vm5, %v2140_v16, %v945_v57  ;;  %vm1039_vm12 = vcmp.eq.s32.totalorder %v3211_v14, %v3215_v18  ;;  %vm1052_vm13 = vcmp.eq.s32.totalorder %v3207_v6, %v3439_v55  ;;  %v3479_v60 = vpop.permute.xlu2 %1021 }
 0x1cc   : > { %1267 = vadd.xlane.f32.xlu1 %v1266_v15  ;;  %v1098_v12 = vsel %vm1034_vm1, %v2126_v39, %v931_v49  ;;  %v1113_v43 = vsel %vm1049_vm6, %v2141_v28, %v946_v46  ;;  %v1144_v24 = vmul.f32 30.0, %v1112_v38  ;;  %v1211_v46 = vsel %vm1033_vm0, %v3428_v26, 0.0 }
 0x1cd   : > { %v1099_v20 = vsel %vm1035_vm2, %v2127_v32, %v932_v4  ;;  %v1130_v61 = vmul.f32 30.0, %v1098_v12  ;;  %v1145_v58 = vmul.f32 30.0, %v1113_v43  ;;  %vm1053_vm14 = vcmp.eq.s32.totalorder %v3211_v14, %v3439_v55 }
 0x1ce   : > { %v858_v31 = vpop.f32.mrf.mxu2  ;;  %v1131_v45 = vmul.f32 30.0, %v1099_v20  ;;  %v3477_v11 = vsel %vm1154_vm3, %v1144_v24, -1e+30  ;;  %v1245_v23 = vadd.f32 %v1211_v46, %v1210_v1  ;;  %vm1054_vm15 = vcmp.eq.s32.totalorder %v3207_v6, %v3479_v60 }
 0x1cf   : > { %v947_v35 = vmul.f32 %v3203_v33, %v858_v31  ;;  %v907_v40 = vpop.f32.mrf.mxu3  ;;  %v840_v25 = vpop.f32.mrf.mxu0  ;;  %v3465_v9 = vsel %vm1154_vm3, %v1130_v61, -1e+30  ;;  %v3485_v39 = vsel %vm1155_vm4, %v1145_v58, -1e+30  ;;  %vm1040_vm0 = vcmp.eq.s32.totalorder %v3207_v6, %v3249_v50 }
 0x1d0   : > { %v948_v53 = vmul.f32 %v3205_v48, %v907_v40  ;;  %v889_v44 = vpop.f32.mrf.mxu1  ;;  %v933_v13 = vmul.f32 %v3203_v33, %v840_v25  ;;  %v3469_v4 = vsel %vm1155_vm4, %v1131_v45, -1e+30  ;;  %v1212_v20 = vsel %vm1034_vm1, %v3465_v9, 0.0 }
 0x1d1   : > { %v2142_v30 = vadd.f32 -0.35, %v947_v35  ;;  %v934_v5 = vmul.f32 %v3205_v48, %v889_v44  ;;  %v1213_v38 = vsel %vm1035_vm2, %v3469_v4, 0.0  ;;  %v1366_v61 = vmax.f32 %v3477_v11, %v3485_v39 }
 0x1d2   : > { %v2143_v57 = vadd.f32 -0.35, %v948_v53  ;;  %v2128_v27 = vadd.f32 -0.35, %v933_v13  ;;  %v1248_v44 = vadd.f32 %v1213_v38, %v1212_v20  ;;  %v1227_v58 = vsel %vm1049_vm6, %v3485_v39, 0.0 }
 0x1d3   : > { %v1114_v42 = vsel %vm1050_vm7, %v2142_v30, %v947_v35  ;;  %1364 = vmax.xlane.f32.xlu2 %v1363_v37  ;;  %1243 = vadd.xlane.f32.xlu0 %v1242_v54  ;;  %v2129_v31 = vadd.f32 -0.35, %v934_v5  ;;  %v1226_v35 = vsel %vm1048_vm5, %v3477_v11, 0.0  ;;  %vm1041_vm1 = vcmp.eq.s32.totalorder %v3211_v14, %v3249_v50 }
 0x1d4   : > { %v1115_v49 = vsel %vm1051_vm9, %v2143_v57, %v948_v53  ;;  %1343 = vmax.xlane.f32.xlu1 %v1342_v59  ;;  %v1146_v2 = vmul.f32 30.0, %v1114_v42  ;;  %v1100_v30 = vsel %vm1036_vm8, %v2128_v27, %v933_v13  ;;  %vm1055_vm2 = vcmp.eq.s32.totalorder %v3211_v14, %v3479_v60 }
 0x1d5   : > { %v1147_v15 = vmul.f32 30.0, %v1115_v49  ;;  %v1101_v57 = vsel %vm1037_vm11, %v2129_v31, %v934_v5  ;;  %v3549_v5 = vpop.permute.xlu0 %1024 }
 0x1d6   : > { %v860_v16 = vpop.f32.mrf.mxu2  ;;  %v3507_v0 = vsel %vm1154_vm3, %v1146_v2, -1e+30  ;;  %v1132_v2 = vmul.f32 30.0, %v1100_v30  ;;  %v1133_v27 = vmul.f32 30.0, %v1101_v57  ;;  %vm1056_vm5 = vcmp.eq.s32.totalorder %v3207_v6, %v3549_v5 }
 0x1d7   : > { %v949_v28 = vmul.f32 %v3203_v33, %v860_v16  ;;  %v909_v32 = vpop.f32.mrf.mxu3  ;;  %v843_v12 = vpop.f32.mrf.mxu0  ;;  %v3513_v24 = vsel %vm1155_vm4, %v1147_v15, -1e+30  ;;  %v1228_v8 = vsel %vm1050_vm7, %v3507_v0, 0.0  ;;  %vm1057_vm6 = vcmp.eq.s32.totalorder %v3211_v14, %v3549_v5 }
 0x1d8   : > { %v950_v34 = vmul.f32 %v3205_v48, %v909_v32  ;;  %v935_v51 = vmul.f32 %v3203_v33, %v843_v12  ;;  %v892_v43 = vpop.f32.mrf.mxu1  ;;  %v1229_v49 = vsel %vm1051_vm9, %v3513_v24, 0.0 }
 0x1d9   : > { %v2144_v40 = vadd.f32 -0.35, %v949_v28  ;;  %v936_v25 = vmul.f32 %v3205_v48, %v892_v43 }
 0x1da   : > { %v2145_v45 = vadd.f32 -0.35, %v950_v34  ;;  %v2130_v53 = vadd.f32 -0.35, %v935_v51 }
 0x1db   : > { %v1116_v37 = vsel %vm1052_vm13, %v2144_v40, %v949_v28  ;;  %v2131_v54 = vadd.f32 -0.35, %v936_v25  ;;  %1367 = vmax.xlane.f32.xlu0 %v1366_v61  ;;  %1246 = vadd.xlane.f32.xlu2 %v1245_v23  ;;  %v1269_v23 = vadd.f32 %v1227_v58, %v1226_v35 }
 0x1dc   : > { %v1117_v59 = vsel %vm1053_vm14, %v2145_v45, %v950_v34  ;;  %v1102_v42 = vsel %vm1038_vm10, %v2130_v53, %v935_v51  ;;  %1249 = vadd.xlane.f32.xlu1 %v1248_v44  ;;  %v1148_v13 = vmul.f32 30.0, %v1116_v37  ;;  %v1272_v51 = vadd.f32 %v1229_v49, %v1228_v8 }
 0x1dd   : > { %v1134_v1 = vmul.f32 30.0, %v1102_v42  ;;  %v1103_v46 = vsel %vm1039_vm12, %v2131_v54, %v936_v25  ;;  %v1149_v28 = vmul.f32 30.0, %v1117_v59  ;;  %v1369_v44 = vmax.f32 %v3507_v0, %v3513_v24 }
 0x1de   : > { %v1135_v15 = vmul.f32 30.0, %v1103_v46  ;;  %v863_v16 = vpop.f32.mrf.mxu2  ;;  %v3567_v25 = vsel %vm1154_vm3, %v1148_v13, -1e+30  ;;  %v3596_v8 = vsel %vm1154_vm3, %v1132_v2, -1e+30 }
 0x1df   : > { %v951_v32 = vmul.f32 %v3203_v33, %v863_v16  ;;  %v912_v12 = vpop.f32.mrf.mxu3  ;;  %v845_v20 = vpop.f32.mrf.mxu0  ;;  %v3556_v38 = vsel %vm1154_vm3, %v1134_v1, -1e+30  ;;  %v3586_v58 = vsel %vm1155_vm4, %v1149_v28, -1e+30  ;;  %v3603_v49 = vsel %vm1155_vm4, %v1133_v27, -1e+30 }
 0x1e0   : > { %v952_v36 = vmul.f32 %v3205_v48, %v912_v12  ;;  %v937_v31 = vmul.f32 %v3203_v33, %v845_v20  ;;  %v894_v34 = vpop.f32.mrf.mxu1  ;;  %v3562_v43 = vsel %vm1155_vm4, %v1135_v15, -1e+30  ;;  %v1216_v61 = vsel %vm1038_vm10, %v3556_v38, 0.0 }
 0x1e1   : > { %v2146_v35 = vadd.f32 -0.35, %v951_v32  ;;  %v938_v40 = vmul.f32 %v3205_v48, %v894_v34  ;;  %v1217_v30 = vsel %vm1039_vm12, %v3562_v43, 0.0  ;;  %v1231_v2 = vsel %vm1053_vm14, %v3586_v58, 0.0 }
 0x1e2   : > { %v2147_v45 = vadd.f32 -0.35, %v952_v36  ;;  %v2132_v53 = vadd.f32 -0.35, %v937_v31  ;;  %v1254_v57 = vadd.f32 %v1217_v30, %v1216_v61  ;;  %v1214_v60 = vsel %vm1036_vm8, %v3596_v8, 0.0 }
 0x1e3   : > { %v1118_v37 = vsel %vm1054_vm15, %v2146_v35, %v951_v32  ;;  %v2133_v54 = vadd.f32 -0.35, %v938_v40  ;;  %1273 = vadd.xlane.f32.xlu0 %v1272_v51  ;;  %1270 = vadd.xlane.f32.xlu2 %v1269_v23  ;;  %v1230_v23 = vsel %vm1052_vm13, %v3567_v25, 0.0  ;;  %v1348_v35 = vmax.f32 %v3596_v8, %v3603_v49 }
 0x1e4   : > { %v1150_v59 = vmul.f32 30.0, %v1118_v37  ;;  %v1119_v42 = vsel %vm1055_vm2, %v2147_v45, %v952_v36  ;;  %v1104_v18 = vsel %vm1040_vm0, %v2132_v53, %v937_v31  ;;  %1370 = vmax.xlane.f32.xlu1 %v1369_v44  ;;  %v1345_v31 = vmax.f32 %v3465_v9, %v3469_v4 }
 0x1e5   : > { %v1151_v13 = vmul.f32 30.0, %v1119_v42  ;;  %v1136_v1 = vmul.f32 30.0, %v1104_v18  ;;  %v1105_v46 = vsel %vm1041_vm1, %v2133_v54, %v938_v40  ;;  %v1275_v45 = vadd.f32 %v1231_v2, %v1230_v23 }
 0x1e6   : > { %v1137_v15 = vmul.f32 30.0, %v1105_v46  ;;  %v865_v16 = vpop.f32.mrf.mxu2  ;;  %v3615_v28 = vsel %vm1154_vm3, %v1150_v59, -1e+30  ;;  %v1215_v59 = vsel %vm1037_vm11, %v3603_v49, 0.0  ;;  %v1351_v3 = vmax.f32 %v3556_v38, %v3562_v43 }
 0x1e7   : > { %v953_v32 = vmul.f32 %v3203_v33, %v865_v16  ;;  %v914_v27 = vpop.f32.mrf.mxu3  ;;  %v3620_v12 = vsel %vm1155_vm4, %v1151_v13, -1e+30  ;;  %v3624_v20 = vsel %vm1154_vm3, %v1136_v1, -1e+30  ;;  %v1232_v55 = vsel %vm1054_vm15, %v3615_v28, 0.0 }
 0x1e8   : > { %v954_v36 = vmul.f32 %v3205_v48, %v914_v27  ;;  %v3635_v33 = vsel %vm1155_vm4, %v1137_v15, -1e+30  ;;  %v1218_v34 = vsel %vm1040_vm0, %v3624_v20, 0.0  ;;  %v1233_v40 = vsel %vm1055_vm2, %v3620_v12, 0.0  ;;  %v3697_v27 = vld [vmem:[#allocation3 + $0x40] sm:$0xff] }
 0x1e9   : > { %v2148_v51 = vadd.f32 -0.35, %v953_v32  ;;  %v1219_v48 = vsel %vm1041_vm1, %v3635_v33, 0.0  ;;  %v1278_v44 = vadd.f32 %v1233_v40, %v1232_v55  ;;  %v1251_v46 = vadd.f32 %v1215_v59, %v1214_v60  ;;  %v1196_v55 = vld [vmem:[#allocation5 + $0x40] sm:$0xff] }
 0x1ea   : > { %v2149_v61 = vadd.f32 -0.35, %v954_v36  ;;  %v1257_v53 = vadd.f32 %v1219_v48, %v1218_v34  ;;  %v1372_v14 = vmax.f32 %v3567_v25, %v3586_v58  ;;  %v1375_v16 = vmax.f32 %v3615_v28, %v3620_v12 }
 0x1eb   : > { %v1120_v30 = vsel %vm1056_vm5, %v2148_v51, %v953_v32  ;;  %1346 = vmax.xlane.f32.xlu2 %v1345_v31  ;;  %1349 = vmax.xlane.f32.xlu0 %v1348_v35  ;;  %v1354_v5 = vmax.f32 %v3624_v20, %v3635_v33 }
 0x1ec   : > { %v1152_v50 = vmul.f32 30.0, %v1120_v30  ;;  %v1121_v37 = vsel %vm1057_vm6, %v2149_v61, %v954_v36  ;;  %1276 = vadd.xlane.f32.xlu1 %v1275_v45  ;;  %v1188_v36 = vld [vmem:[#allocation5] sm:$0xff]  ;;  %v1197_v45 = vld [vmem:[#allocation5 + $0x48] sm:$0xff] }
 0x1ed   : > { %v1153_v54 = vmul.f32 30.0, %v1121_v37 }
 0x1ee   : > { %v3666_v42 = vsel %vm1154_vm3, %v1152_v50, -1e+30  ;;  %vm1300_vm3 = vcmask 7168  }
 0x1ef   : > { %v3670_v18 = vsel %vm1155_vm4, %v1153_v54, -1e+30  ;;  %v1234_v13 = vsel %vm1056_vm5, %v3666_v42, 0.0 }
 0x1f0   : > { %v1235_v1 = vsel %vm1057_vm6, %v3670_v18, 0.0  ;;  %v1378_v6 = vmax.f32 %v3666_v42, %v3670_v18 }
 0x1f1   : > { %v1281_v15 = vadd.f32 %v1235_v1, %v1234_v13 }
 0x1f3   : > { %1252 = vadd.xlane.f32.xlu2 %v1251_v46  ;;  %1255 = vadd.xlane.f32.xlu0 %v1254_v57  ;;  %v3687_v57 = vld [vmem:[#allocation3] sm:$0xff]  ;;  %v1189_v46 = vld [vmem:[#allocation5 + $0x8] sm:$0xff] }
 0x1f4   : > { %1352 = vmax.xlane.f32.xlu1 %v1351_v3  ;;  %v1198_v3 = vld [vmem:[#allocation5 + $0x50] sm:$0xff] }
 0x1fb   : > { %1373 = vmax.xlane.f32.xlu2 %v1372_v14  ;;  %1376 = vmax.xlane.f32.xlu0 %v1375_v16 }
 0x1fc   : > { %1258 = vadd.xlane.f32.xlu1 %v1257_v53  ;;  %v3709_v53 = vld [vmem:[#allocation3 + $0x8] sm:$0xff] }
 0x203   : > { %1279 = vadd.xlane.f32.xlu2 %v1278_v44  ;;  %1282 = vadd.xlane.f32.xlu0 %v1281_v15  ;;  %v3711_v44 = vld [vmem:[#allocation3 + $0x48] sm:$0xff]  ;;  %v3729_v15 = vld [vmem:[#allocation3 + $0x10] sm:$0xff] }
 0x204   : > { %1379 = vmax.xlane.f32.xlu1 %v1378_v6 }
 0x20b   : > { %1355 = vmax.xlane.f32.xlu2 %v1354_v5 }
 0x226   : > { %v1335_v23 = vpop.xlane.xlu1 %1334 }
 0x227   : > { %v3690_v2 = vmax.f32 %v3687_v57, %v1335_v23 }
 0x229   : > { %1733 = vst.msk [vmem:[#allocation3] sm:$0xff] %vm1300_vm3, %v3690_v2  ;;  %1479 = vperm.xlu2 %2343, %v3690_v2  }
 0x22d   : > { %v1359_v31 = vpop.xlane.xlu0 %1358 }
 0x22e   : > { %v3700_v34 = vmax.f32 %v3697_v27, %v1359_v31  ;;  %v1262_v51 = vpop.xlane.xlu2 %1261  ;;  %v1238_v35 = vpop.xlane.xlu1 %1237  ;;  %v3742_v31 = vld [vmem:[#allocation3 + $0x50] sm:$0xff] }
 0x22f   : > { %v1292_v48 = vadd.f32 %v1262_v51, %v1196_v55  ;;  %v1284_v40 = vadd.f32 %v1238_v35, %v1188_v36  ;;  %v1190_v51 = vld [vmem:[#allocation5 + $0x10] sm:$0xff]  ;;  %v3744_v35 = vld [vmem:[#allocation3 + $0x18] sm:$0xff]  ;;  %v3775_v36 = vld [vmem:[#allocation3 + $0x60] sm:$0xff] }
 0x230   : > { %1741 = vst.msk [vmem:[#allocation3 + $0x40] sm:$0xff] %vm1300_vm3, %v3700_v34  ;;  %1519 = vperm.xlu1 %2342, %v3700_v34  }
 0x231   : > { %1309 = vst.msk [vmem:[#allocation5 + $0x40] sm:$0xff] %vm1300_vm3, %v1292_v48 }
 0x232   : > { %1301 = vst.msk [vmem:[#allocation5] sm:$0xff] %vm1300_vm3, %v1284_v40 }
 0x233   : > { %4074 = vst [vmem:[#allocation12_spill] sm:$0xff] %v3775_v36 }
 0x236   : > { %v1265_v30 = vpop.xlane.xlu0 %1264  ;;  %v1338_v50 = vpop.xlane.xlu2 %1337 }
 0x237   : > { %v1293_v37 = vadd.f32 %v1265_v30, %v1197_v45  ;;  %v3714_v54 = vmax.f32 %v3709_v53, %v1338_v50  ;;  %v1362_v60 = vpop.xlane.xlu1 %1361 }
 0x238   : > { %v3717_v59 = vmax.f32 %v3711_v44, %v1362_v60 }
 0x239   : > { %1310 = vst.msk [vmem:[#allocation5 + $0x48] sm:$0xff] %vm1300_vm3, %v1293_v37  ;;  %1484 = vperm.xlu0 %2341, %v3714_v54  }
 0x23a   : > { %1734 = vst.msk [vmem:[#allocation3 + $0x8] sm:$0xff] %vm1300_vm3, %v3714_v54 }
 0x23b   : > { %1742 = vst.msk [vmem:[#allocation3 + $0x48] sm:$0xff] %vm1300_vm3, %v3717_v59 }
 0x23e   : > { %v1241_v14 = vpop.xlane.xlu2 %1240  ;;  %v1341_v16 = vpop.xlane.xlu0 %1340 }
 0x23f   : > { %v1285_v6 = vadd.f32 %v1241_v14, %v1189_v46  ;;  %v3732_v5 = vmax.f32 %v3729_v15, %v1341_v16  ;;  %v1268_v23 = vpop.xlane.xlu1 %1267  ;;  %v1191_v14 = vld [vmem:[#allocation5 + $0x18] sm:$0xff]  ;;  %v1192_v16 = vld [vmem:[#allocation5 + $0x20] sm:$0xff] }
 0x240   : > { %v1294_v55 = vadd.f32 %v1268_v23, %v1198_v3  ;;  %v3763_v3 = vld [vmem:[#allocation3 + $0x58] sm:$0xff] }
 0x241   : > { %1302 = vst.msk [vmem:[#allocation5 + $0x8] sm:$0xff] %vm1300_vm3, %v1285_v6  ;;  %1524 = vperm.xlu0 %2341, %v3717_v59   ;;  %1489 = vperm.xlu1 %2342, %v3732_v5   ;;  %v1199_v46 = vld [vmem:[#allocation5 + $0x58] sm:$0xff] }
 0x242   : > { %1735 = vst.msk [vmem:[#allocation3 + $0x10] sm:$0xff] %vm1300_vm3, %v3732_v5 }
 0x243   : > { %1311 = vst.msk [vmem:[#allocation5 + $0x50] sm:$0xff] %vm1300_vm3, %v1294_v55 }
 0x246   : > { %v1365_v48 = vpop.xlane.xlu2 %1364  ;;  %v1244_v40 = vpop.xlane.xlu0 %1243 }
 0x247   : > { %v3747_v45 = vmax.f32 %v3742_v31, %v1365_v48  ;;  %v1286_v30 = vadd.f32 %v1244_v40, %v1190_v51  ;;  %v1344_v50 = vpop.xlane.xlu1 %1343 }
 0x248   : > { %v3750_v37 = vmax.f32 %v3744_v35, %v1344_v50  ;;  %v1200_v50 = vld [vmem:[#allocation5 + $0x60] sm:$0xff] }
 0x249   : > { %1743 = vst.msk [vmem:[#allocation3 + $0x50] sm:$0xff] %vm1300_vm3, %v3747_v45  ;;  %1529 = vperm.xlu2 %2343, %v3747_v45  }
 0x24a   : > { %1303 = vst.msk [vmem:[#allocation5 + $0x10] sm:$0xff] %vm1300_vm3, %v1286_v30  ;;  %1494 = vperm.xlu0 %2341, %v3750_v37  }
 0x24b   : > { %1736 = vst.msk [vmem:[#allocation3 + $0x18] sm:$0xff] %vm1300_vm3, %v3750_v37 }
 0x24e   : > { %v1368_v6 = vpop.xlane.xlu0 %1367  ;;  %v1247_v23 = vpop.xlane.xlu2 %1246 }
 0x24f   : > { %v3766_v55 = vmax.f32 %v3763_v3, %v1368_v6  ;;  %v1287_v51 = vadd.f32 %v1247_v23, %v1191_v14  ;;  %v1250_v48 = vpop.xlane.xlu1 %1249 }
 0x250   : > { %v1288_v40 = vadd.f32 %v1250_v48, %v1192_v16 }
 0x251   : > { %1744 = vst.msk [vmem:[#allocation3 + $0x58] sm:$0xff] %vm1300_vm3, %v3766_v55  ;;  %1534 = vperm.xlu1 %2342, %v3766_v55  }
 0x252   : > { %1304 = vst.msk [vmem:[#allocation5 + $0x18] sm:$0xff] %vm1300_vm3, %v1287_v51 }
 0x253   : > { %1305 = vst.msk [vmem:[#allocation5 + $0x20] sm:$0xff] %vm1300_vm3, %v1288_v40  ;;  %v3787_v40 = vld [vmem:[#allocation3 + $0x20] sm:$0xff] }
 0x256   : > { %v1274_v6 = vpop.xlane.xlu0 %1273  ;;  %v1271_v14 = vpop.xlane.xlu2 %1270 }
 0x257   : > { %v1296_v23 = vadd.f32 %v1274_v6, %v1200_v50  ;;  %v1295_v16 = vadd.f32 %v1271_v14, %v1199_v46  ;;  %v1371_v48 = vpop.xlane.xlu1 %1370  ;;  %v3789_v50 = vld [vmem:[#allocation3 + $0x28] sm:$0xff] }
 0x258   : > { %v3778_v30 = vmax.f32 %v3775_v36, %v1371_v48  ;;  %4076 = vst [vmem:[#allocation14_spill] sm:$0xff] %v3789_v50  ;;  %v1201_v46 = vld [vmem:[#allocation5 + $0x68] sm:$0xff] }
 0x259   : > { %1313 = vst.msk [vmem:[#allocation5 + $0x60] sm:$0xff] %vm1300_vm3, %v1296_v23 }
 0x25a   : > { %4075 = vst [vmem:[#allocation13_spill] sm:$0xff] %v3778_v30  ;;  %1539 = vperm.xlu0 %2341, %v3778_v30  }
 0x25b   : > { %1312 = vst.msk [vmem:[#allocation5 + $0x58] sm:$0xff] %vm1300_vm3, %v1295_v16 }
 0x25c   : > { %1745 = vst.msk [vmem:[#allocation3 + $0x60] sm:$0xff] %vm1300_vm3, %v3778_v30 }
 0x25e   : > { %v1347_v6 = vpop.xlane.xlu2 %1346  ;;  %v1350_v14 = vpop.xlane.xlu0 %1349 }
 0x25f   : > { %v3792_v48 = vmax.f32 %v3787_v40, %v1347_v6  ;;  %v3795_v23 = vmax.f32 %v3789_v50, %v1350_v14  ;;  %v1277_v16 = vpop.xlane.xlu1 %1276  ;;  %v1193_v6 = vld [vmem:[#allocation5 + $0x28] sm:$0xff]  ;;  %v3808_v14 = vld [vmem:[#allocation3 + $0x30] sm:$0xff] }
 0x260   : > { %v1297_v51 = vadd.f32 %v1277_v16, %v1201_v46  ;;  %v1194_v46 = vld [vmem:[#allocation5 + $0x30] sm:$0xff]  ;;  %4078 = vst [vmem:[#allocation16_spill] sm:$0xff] %v3808_v14 }
 0x261   : > { %4077 = vst [vmem:[#allocation15_spill] sm:$0xff] %v3795_v23  ;;  %1499 = vperm.xlu2 %2343, %v3792_v48   ;;  %1504 = vperm.xlu1 %2342, %v3795_v23  }
 0x262   : > { %1737 = vst.msk [vmem:[#allocation3 + $0x20] sm:$0xff] %vm1300_vm3, %v3792_v48 }
 0x263   : > { %1738 = vst.msk [vmem:[#allocation3 + $0x28] sm:$0xff] %vm1300_vm3, %v3795_v23 }
 0x264   : > { %1314 = vst.msk [vmem:[#allocation5 + $0x68] sm:$0xff] %vm1300_vm3, %v1297_v51  ;;  %v3820_v51 = vld [vmem:[#allocation3 + $0x68] sm:$0xff] }
 0x265   : > { %4080 = vst [vmem:[#allocation18_spill] sm:$0xff] %v3820_v51 }
 0x266   : > { %v1253_v16 = vpop.xlane.xlu2 %1252  ;;  %v1256_v60 = vpop.xlane.xlu0 %1255 }
 0x267   : > { %v1289_v13 = vadd.f32 %v1253_v16, %v1193_v6  ;;  %v1290_v61 = vadd.f32 %v1256_v60, %v1194_v46  ;;  %v1353_v32 = vpop.xlane.xlu1 %1352  ;;  %v3822_v6 = vld [vmem:[#allocation3 + $0x70] sm:$0xff]  ;;  %v1195_v60 = vld [vmem:[#allocation5 + $0x38] sm:$0xff] }
 0x268   : > { %v3811_v1 = vmax.f32 %v3808_v14, %v1353_v32  ;;  %4081 = vst [vmem:[#allocation19_spill] sm:$0xff] %v3822_v6 }
 0x269   : > { %1306 = vst.msk [vmem:[#allocation5 + $0x28] sm:$0xff] %vm1300_vm3, %v1289_v13 }
 0x26a   : > { %4079 = vst [vmem:[#allocation17_spill] sm:$0xff] %v3811_v1  ;;  %1509 = vperm.xlu0 %2341, %v3811_v1  }
 0x26b   : > { %1307 = vst.msk [vmem:[#allocation5 + $0x30] sm:$0xff] %vm1300_vm3, %v1290_v61 }
 0x26c   : > { %1739 = vst.msk [vmem:[#allocation3 + $0x30] sm:$0xff] %vm1300_vm3, %v3811_v1 }
 0x26e   : > { %v1374_v46 = vpop.xlane.xlu2 %1373  ;;  %v1377_v32 = vpop.xlane.xlu0 %1376 }
 0x26f   : > { %v3825_v16 = vmax.f32 %v3820_v51, %v1374_v46  ;;  %v3828_v61 = vmax.f32 %v3822_v6, %v1377_v32  ;;  %v1259_v13 = vpop.xlane.xlu1 %1258  ;;  %v1202_v46 = vld [vmem:[#allocation5 + $0x70] sm:$0xff]  ;;  %v3841_v32 = vld [vmem:[#allocation3 + $0x78] sm:$0xff] }
 0x270   : > { %v1291_v23 = vadd.f32 %v1259_v13, %v1195_v60  ;;  %v1203_v60 = vld [vmem:[#allocation5 + $0x78] sm:$0xff]  ;;  %4084 = vst [vmem:[#allocation22_spill] sm:$0xff] %v3841_v32 }
 0x271   : > { %4082 = vst [vmem:[#allocation20_spill] sm:$0xff] %v3825_v16  ;;  %1544 = vperm.xlu2 %2343, %v3825_v16   ;;  %1549 = vperm.xlu1 %2342, %v3828_v61  }
 0x272   : > { %4083 = vst [vmem:[#allocation21_spill] sm:$0xff] %v3828_v61 }
 0x273   : > { %1746 = vst.msk [vmem:[#allocation3 + $0x68] sm:$0xff] %vm1300_vm3, %v3825_v16 }
 0x274   : > { %1747 = vst.msk [vmem:[#allocation3 + $0x70] sm:$0xff] %vm1300_vm3, %v3828_v61 }
 0x275   : > { %1308 = vst.msk [vmem:[#allocation5 + $0x38] sm:$0xff] %vm1300_vm3, %v1291_v23  ;;  %v3853_v23 = vld [vmem:[#allocation3 + $0x38] sm:$0xff] }
 0x276   : > { %v1280_v13 = vpop.xlane.xlu2 %1279  ;;  %v1283_v14 = vpop.xlane.xlu0 %1282  ;;  %4086 = vst [vmem:[#allocation24_spill] sm:$0xff] %v3853_v23 }
 0x277   : > { %v1298_v51 = vadd.f32 %v1280_v13, %v1202_v46  ;;  %v1299_v50 = vadd.f32 %v1283_v14, %v1203_v60  ;;  %v1380_v30 = vpop.xlane.xlu1 %1379 }
 0x278   : > { %v3844_v1 = vmax.f32 %v3841_v32, %v1380_v30 }
 0x279   : > { %1315 = vst.msk [vmem:[#allocation5 + $0x70] sm:$0xff] %vm1300_vm3, %v1298_v51 }
 0x27a   : > { %4085 = vst [vmem:[#allocation23_spill] sm:$0xff] %v3844_v1  ;;  %1554 = vperm.xlu0 %2341, %v3844_v1  }
 0x27b   : > { %1316 = vst.msk [vmem:[#allocation5 + $0x78] sm:$0xff] %vm1300_vm3, %v1299_v50 }
 0x27c   : > { %1748 = vst.msk [vmem:[#allocation3 + $0x78] sm:$0xff] %vm1300_vm3, %v3844_v1 }
 0x27e   : > { %v1356_v46 = vpop.xlane.xlu2 %1355 }
 0x27f   : > { %v3856_v14 = vmax.f32 %v3853_v23, %v1356_v46 }
 0x281   : > { %4087 = vst [vmem:[#allocation25_spill] sm:$0xff] %v3856_v14  ;;  %1514 = vperm.xlu2 %2343, %v3856_v14  }
 0x282   : > { %1740 = vst.msk [vmem:[#allocation3 + $0x38] sm:$0xff] %vm1300_vm3, %v3856_v14 }
 0x286   : > { %v1480_v50 = vpop.permute.xlu2 %1479 }
 0x287   : > { %v1557_v51 = vsub.f32 %v3234_v22, %v1480_v50  ;;  %v1558_v60 = vsub.f32 %v3240_v62, %v1480_v50 }
 0x289   : > { %v1589_v13 = vmul.f32 1.442695, %v1557_v51  ;;  %v1591_v61 = vmul.f32 1.442695, %v1558_v60 }
 0x28b   : > { %2344 = vpow2.f32 %v1589_v13 }
 0x28c   : > { %2346 = vpow2.f32 %v1591_v61 }
 0x291   : > { %v2345_v30 = vpop.eup %2344 }
 0x292   : > { %v2347_v6 = vpop.eup %2346 }
 0x293   : > { %v1653_v14 = vadd.f32 %v2347_v6, %v2345_v30 }
 0x2a2   : > { %v1520_v1 = vpop.permute.xlu1 %1519 }
 0x2a3   : > { %v1573_v46 = vsub.f32 %v3263_v52, %v1520_v1  ;;  %v1574_v32 = vsub.f32 %v3279_v10, %v1520_v1  ;;  %v1530_v22 = vpop.permute.xlu2 %1529 }
 0x2a4   : > { %v1577_v52 = vsub.f32 %v3365_v56, %v1530_v22  ;;  %v1578_v1 = vsub.f32 %v3373_v63, %v1530_v22 }
 0x2a5   : > { %v1621_v16 = vmul.f32 1.442695, %v1573_v46  ;;  %v1623_v23 = vmul.f32 1.442695, %v1574_v32 }
 0x2a6   : > { %v1629_v6 = vmul.f32 1.442695, %v1577_v52 }
 0x2a7   : > { %2348 = vpow2.f32 %v1621_v16  ;;  %v1631_v16 = vmul.f32 1.442695, %v1578_v1 }
 0x2a8   : > { %2350 = vpow2.f32 %v1623_v23 }
 0x2aa   : > { %1654 = vadd.xlane.f32.xlu2 %v1653_v14 }
 0x2ab   : > { %v1485_v36 = vpop.permute.xlu0 %1484 }
 0x2ac   : > { %v1559_v62 = vsub.f32 %v3310_v17, %v1485_v36  ;;  %v1560_v50 = vsub.f32 %v3314_v21, %v1485_v36 }
 0x2ad   : > { %v2349_v61 = vpop.eup %2348 }
 0x2ae   : > { %v2351_v51 = vpop.eup %2350  ;;  %v1593_v60 = vmul.f32 1.442695, %v1559_v62  ;;  %v1595_v10 = vmul.f32 1.442695, %v1560_v50 }
 0x2af   : > { %v1677_v13 = vadd.f32 %v2351_v51, %v2349_v61 }
 0x2b0   : > { %2352 = vpow2.f32 %v1593_v60 }
 0x2b1   : > { %2354 = vpow2.f32 %v1595_v10  ;;  %1678 = vadd.xlane.f32.xlu0 %v1677_v13 }
 0x2b2   : > { %2356 = vpow2.f32 %v1629_v6 }
 0x2b3   : > { %v1525_v32 = vpop.permute.xlu0 %1524  ;;  %v1490_v23 = vpop.permute.xlu1 %1489  ;;  %2358 = vpow2.f32 %v1631_v16 }
 0x2b4   : > { %v1575_v17 = vsub.f32 %v3306_v19, %v1525_v32  ;;  %v1576_v21 = vsub.f32 %v3322_v29, %v1525_v32  ;;  %v1561_v36 = vsub.f32 %v3357_v47, %v1490_v23  ;;  %v1562_v56 = vsub.f32 %v3361_v41, %v1490_v23 }
 0x2b6   : > { %v2353_v14 = vpop.eup %2352  ;;  %v1625_v30 = vmul.f32 1.442695, %v1575_v17  ;;  %v1627_v63 = vmul.f32 1.442695, %v1576_v21  ;;  %v1597_v46 = vmul.f32 1.442695, %v1561_v36 }
 0x2b7   : > { %v2355_v22 = vpop.eup %2354  ;;  %v1599_v62 = vmul.f32 1.442695, %v1562_v56 }
 0x2b8   : > { %2360 = vpow2.f32 %v1625_v30  ;;  %v1656_v50 = vadd.f32 %v2355_v22, %v2353_v14  ;;  %v2357_v29 = vpop.eup %2356 }
 0x2b9   : > { %2362 = vpow2.f32 %v1627_v63  ;;  %v2359_v51 = vpop.eup %2358 }
 0x2ba   : > { %2364 = vpow2.f32 %v1597_v46  ;;  %1657 = vadd.xlane.f32.xlu1 %v1656_v50  ;;  %v1683_v21 = vadd.f32 %v2359_v51, %v2357_v29 }
 0x2bb   : > { %2366 = vpow2.f32 %v1599_v62  ;;  %v1500_v19 = vpop.permute.xlu2 %1499 }
 0x2bc   : > { %v1565_v47 = vsub.f32 %v3465_v9, %v1500_v19  ;;  %v1566_v41 = vsub.f32 %v3469_v4, %v1500_v19  ;;  %v1495_v61 = vpop.permute.xlu0 %1494 }
 0x2bd   : > { %v1563_v52 = vsub.f32 %v3424_v7, %v1495_v61  ;;  %v1564_v60 = vsub.f32 %v3428_v26, %v1495_v61 }
 0x2be   : > { %v2361_v10 = vpop.eup %2360  ;;  %v1605_v1 = vmul.f32 1.442695, %v1565_v47  ;;  %v1607_v13 = vmul.f32 1.442695, %v1566_v41 }
 0x2bf   : > { %v2363_v6 = vpop.eup %2362  ;;  %v1601_v16 = vmul.f32 1.442695, %v1563_v52  ;;  %v1603_v32 = vmul.f32 1.442695, %v1564_v60 }
 0x2c0   : > { %v2365_v23 = vpop.eup %2364  ;;  %2368 = vpow2.f32 %v1605_v1  ;;  %v1680_v17 = vadd.f32 %v2363_v6, %v2361_v10 }
 0x2c1   : > { %v2367_v36 = vpop.eup %2366  ;;  %2370 = vpow2.f32 %v1607_v13 }
 0x2c2   : > { %2372 = vpow2.f32 %v1601_v16  ;;  %1681 = vadd.xlane.f32.xlu2 %v1680_v17  ;;  %1684 = vadd.xlane.f32.xlu1 %v1683_v21  ;;  %v1659_v9 = vadd.f32 %v2367_v36, %v2365_v23 }
 0x2c3   : > { %2374 = vpow2.f32 %v1603_v32  ;;  %v1535_v7 = vpop.permute.xlu1 %1534 }
 0x2c4   : > { %1660 = vadd.xlane.f32.xlu0 %v1659_v9  ;;  %v1579_v26 = vsub.f32 %v3477_v11, %v1535_v7  ;;  %v1580_v4 = vsub.f32 %v3485_v39, %v1535_v7 }
 0x2c6   : > { %v2369_v56 = vpop.eup %2368  ;;  %v1633_v14 = vmul.f32 1.442695, %v1579_v26  ;;  %v1635_v30 = vmul.f32 1.442695, %v1580_v4 }
 0x2c7   : > { %v2371_v63 = vpop.eup %2370 }
 0x2c8   : > { %v2373_v46 = vpop.eup %2372  ;;  %2376 = vpow2.f32 %v1633_v14  ;;  %v1665_v22 = vadd.f32 %v2371_v63, %v2369_v56 }
 0x2c9   : > { %v2375_v62 = vpop.eup %2374  ;;  %2378 = vpow2.f32 %v1635_v30 }
 0x2ca   : > { %1666 = vadd.xlane.f32.xlu1 %v1665_v22  ;;  %v1662_v50 = vadd.f32 %v2375_v62, %v2373_v46 }
 0x2cb   : > { %v1545_v52 = vpop.permute.xlu2 %1544 }
 0x2cc   : > { %1663 = vadd.xlane.f32.xlu2 %v1662_v50  ;;  %v1540_v19 = vpop.permute.xlu0 %1539  ;;  %v1584_v56 = vsub.f32 %v3586_v58, %v1545_v52 }
 0x2cd   : > { %v1581_v29 = vsub.f32 %v3507_v0, %v1540_v19  ;;  %v1582_v47 = vsub.f32 %v3513_v24, %v1540_v19 }
 0x2ce   : > { %v2377_v11 = vpop.eup %2376 }
 0x2cf   : > { %v2379_v41 = vpop.eup %2378  ;;  %v1637_v39 = vmul.f32 1.442695, %v1581_v29  ;;  %v1639_v61 = vmul.f32 1.442695, %v1582_v47 }
 0x2d0   : > { %v1686_v51 = vadd.f32 %v2379_v41, %v2377_v11 }
 0x2d1   : > { %2380 = vpow2.f32 %v1637_v39 }
 0x2d2   : > { %1687 = vadd.xlane.f32.xlu0 %v1686_v51  ;;  %2382 = vpow2.f32 %v1639_v61 }
 0x2d3   : > { %v1505_v60 = vpop.permute.xlu1 %1504 }
 0x2d4   : > { %v1567_v10 = vsub.f32 %v3596_v8, %v1505_v60  ;;  %v1568_v1 = vsub.f32 %v3603_v49, %v1505_v60  ;;  %v1583_v49 = vsub.f32 %v3567_v25, %v1545_v52 }
 0x2d6   : > { %v1609_v13 = vmul.f32 1.442695, %v1567_v10  ;;  %v1611_v6 = vmul.f32 1.442695, %v1568_v1 }
 0x2d7   : > { %v2381_v16 = vpop.eup %2380 }
 0x2d8   : > { %2384 = vpow2.f32 %v1609_v13  ;;  %v2383_v0 = vpop.eup %2382 }
 0x2d9   : > { %2386 = vpow2.f32 %v1611_v6  ;;  %v1689_v24 = vadd.f32 %v2383_v0, %v2381_v16  ;;  %v4088_v0 = vsub.f32 %v3687_v57, %v3690_v2  ;;  %v1453_v57 = vld [vmem:[#allocation4 + $0x40] sm:$0xff] }
 0x2db   : > { %v1515_v32 = vpop.permute.xlu2 %1514  ;;  %1690 = vadd.xlane.f32.xlu2 %v1689_v24 }
 0x2dc   : > { %v1571_v23 = vsub.f32 %v3624_v20, %v1515_v32  ;;  %v1572_v17 = vsub.f32 %v3635_v33, %v1515_v32  ;;  %v1510_v21 = vpop.permute.xlu0 %1509  ;;  %v1641_v20 = vmul.f32 1.442695, %v1583_v49  ;;  %v1643_v33 = vmul.f32 1.442695, %v1584_v56 }
 0x2dd   : > { %v1569_v36 = vsub.f32 %v3556_v38, %v1510_v21  ;;  %v1570_v8 = vsub.f32 %v3562_v43, %v1510_v21 }
 0x2de   : > { %v2385_v9 = vpop.eup %2384  ;;  %v1617_v7 = vmul.f32 1.442695, %v1571_v23  ;;  %v1619_v26 = vmul.f32 1.442695, %v1572_v17  ;;  %v1445_v23 = vld [vmem:[#allocation4] sm:$0xff] }
 0x2df   : > { %v2387_v4 = vpop.eup %2386  ;;  %v1613_v14 = vmul.f32 1.442695, %v1569_v36  ;;  %v1615_v30 = vmul.f32 1.442695, %v1570_v8  ;;  %v4090_v8 = vsub.f32 %v3709_v53, %v3714_v54  ;;  %v4093_v54 = vsub.f32 %v3729_v15, %v3732_v5  ;;  %v1454_v5 = vld [vmem:[#allocation4 + $0x48] sm:$0xff] }
 0x2e0   : > { %2388 = vpow2.f32 %v1617_v7  ;;  %v1668_v63 = vadd.f32 %v2387_v4, %v2385_v9  ;;  %v4092_v4 = vsub.f32 %v3742_v31, %v3747_v45 }
 0x2e1   : > { %2390 = vpow2.f32 %v1619_v26  ;;  %v1415_v9 = vmul.f32 1.442695, %v4090_v8 }
 0x2e2   : > { %2392 = vpow2.f32 %v1613_v14  ;;  %1669 = vadd.xlane.f32.xlu0 %v1668_v63  ;;  %v1433_v56 = vmul.f32 1.442695, %v4092_v4  ;;  %v1417_v14 = vmul.f32 1.442695, %v4093_v54  ;;  %v4107_v4 = vld [vmem:[#allocation17_spill] sm:$0xff] }
 0x2e3   : > { %2394 = vpow2.f32 %v1615_v30  ;;  %v1550_v38 = vpop.permute.xlu1 %1549  ;;  %v1446_v30 = vld [vmem:[#allocation4 + $0x8] sm:$0xff] }
 0x2e4   : > { %v1585_v43 = vsub.f32 %v3615_v28, %v1550_v38  ;;  %v1586_v25 = vsub.f32 %v3620_v12, %v1550_v38  ;;  %2396 = vpow2.f32 %v1641_v20  ;;  %v4095_v38 = vsub.f32 %v3744_v35, %v3750_v37  ;;  %v1450_v54 = vld [vmem:[#allocation4 + $0x28] sm:$0xff] }
 0x2e5   : > { %2398 = vpow2.f32 %v1643_v33 }
 0x2e6   : > { %v2389_v46 = vpop.eup %2388  ;;  %v1645_v22 = vmul.f32 1.442695, %v1585_v43  ;;  %v1647_v62 = vmul.f32 1.442695, %v1586_v25  ;;  %v1419_v15 = vmul.f32 1.442695, %v4095_v38 }
 0x2e7   : > { %v2391_v58 = vpop.eup %2390  ;;  %v1455_v43 = vld [vmem:[#allocation4 + $0x50] sm:$0xff] }
 0x2e8   : > { %v2393_v50 = vpop.eup %2392  ;;  %2400 = vpow2.f32 %v1645_v22  ;;  %v1674_v19 = vadd.f32 %v2391_v58, %v2389_v46  ;;  %v1447_v46 = vld [vmem:[#allocation4 + $0x10] sm:$0xff] }
 0x2e9   : > { %v2395_v29 = vpop.eup %2394  ;;  %2402 = vpow2.f32 %v1647_v62 }
 0x2ea   : > { %1675 = vadd.xlane.f32.xlu1 %v1674_v19  ;;  %v1671_v47 = vadd.f32 %v2395_v29, %v2393_v50  ;;  %v2397_v11 = vpop.eup %2396  ;;  %v4096_v29 = vsub.f32 %v3763_v3, %v3766_v55 }
 0x2eb   : > { %v2399_v39 = vpop.eup %2398 }
 0x2ec   : > { %1672 = vadd.xlane.f32.xlu2 %v1671_v47  ;;  %v1555_v41 = vpop.permute.xlu0 %1554  ;;  %v1692_v10 = vadd.f32 %v2399_v39, %v2397_v11  ;;  %v1435_v47 = vmul.f32 1.442695, %v4096_v29  ;;  %v4116_v29 = vld [vmem:[#allocation23_spill] sm:$0xff] }
 0x2ed   : > { %v1587_v28 = vsub.f32 %v3666_v42, %v1555_v41  ;;  %v1588_v12 = vsub.f32 %v3670_v18, %v1555_v41  ;;  %v1413_v42 = vmul.f32 1.442695, %v4088_v0  ;;  %v4089_v18 = vsub.f32 %v3697_v27, %v3700_v34  ;;  %v1449_v41 = vld [vmem:[#allocation4 + $0x20] sm:$0xff] }
 0x2ee   : > { %v2401_v61 = vpop.eup %2400  ;;  %v4091_v27 = vsub.f32 %v3711_v44, %v3717_v59  ;;  %v4094_v44 = vsub.f32 %v3787_v40, %v3792_v48 }
 0x2ef   : > { %v2403_v51 = vpop.eup %2402  ;;  %v1649_v52 = vmul.f32 1.442695, %v1587_v28  ;;  %v1651_v60 = vmul.f32 1.442695, %v1588_v12  ;;  %v1429_v24 = vmul.f32 1.442695, %v4089_v18 }
 0x2f0   : > { %v1695_v1 = vadd.f32 %v2403_v51, %v2401_v61  ;;  %v1431_v34 = vmul.f32 1.442695, %v4091_v27  ;;  %v1421_v59 = vmul.f32 1.442695, %v4094_v44  ;;  %v1448_v28 = vld [vmem:[#allocation4 + $0x18] sm:$0xff] }
 0x2f1   : > { %2404 = vpow2.f32 %v1649_v52 }
 0x2f2   : > { %2406 = vpow2.f32 %v1651_v60  ;;  %1693 = vadd.xlane.f32.xlu1 %v1692_v10  ;;  %1696 = vadd.xlane.f32.xlu0 %v1695_v1  ;;  %v4097_v10 = vld [vmem:[#allocation12_spill] sm:$0xff]  ;;  %v4098_v1 = vld [vmem:[#allocation13_spill] sm:$0xff] }
 0x2f3   : > { %2408 = vpow2.f32 %v1413_v42 }
 0x2f4   : > { %2410 = vpow2.f32 %v1429_v24  ;;  %v4100_v24 = vld [vmem:[#allocation14_spill] sm:$0xff] }
 0x2f5   : > { %2412 = vpow2.f32 %v1415_v9  ;;  %v4103_v9 = vld [vmem:[#allocation24_spill] sm:$0xff] }
 0x2f6   : > { %2414 = vpow2.f32 %v1431_v34  ;;  %v4106_v34 = vld [vmem:[#allocation16_spill] sm:$0xff] }
 0x2f7   : > { %v2405_v13 = vpop.eup %2404  ;;  %2416 = vpow2.f32 %v1433_v56  ;;  %v4108_v56 = vsub.f32 %v4106_v34, %v4107_v4 }
 0x2f8   : > { %v2407_v6 = vpop.eup %2406  ;;  %2418 = vpow2.f32 %v1417_v14 }
 0x2f9   : > { %v1698_v16 = vadd.f32 %v2407_v6, %v2405_v13  ;;  %v2409_v32 = vpop.eup %2408  ;;  %2420 = vpow2.f32 %v1421_v59  ;;  %v4099_v13 = vsub.f32 %v4097_v10, %v4098_v1 }
 0x2fa   : > { %v1461_v17 = vmul.f32 %v2409_v32, %v1445_v23  ;;  %v2411_v49 = vpop.eup %2410  ;;  %2422 = vpow2.f32 %v1419_v15  ;;  %v4101_v32 = vld [vmem:[#allocation15_spill] sm:$0xff] }
 0x2fb   : > { %1699 = vadd.xlane.f32.xlu2 %v1698_v16  ;;  %v1469_v2 = vmul.f32 %v2411_v49, %v1453_v57  ;;  %v2413_v53 = vpop.eup %2412  ;;  %2424 = vpow2.f32 %v1435_v47  ;;  %v1437_v6 = vmul.f32 1.442695, %v4099_v13  ;;  %v1456_v16 = vld [vmem:[#allocation4 + $0x58] sm:$0xff]  ;;  %v4102_v23 = vsub.f32 %v4100_v24, %v4101_v32  ;;  %v4104_v49 = vld [vmem:[#allocation25_spill] sm:$0xff] }
 0x2fc   : > { %v1462_v63 = vmul.f32 %v2413_v53, %v1446_v30  ;;  %v2415_v31 = vpop.eup %2414  ;;  %v4105_v57 = vsub.f32 %v4103_v9, %v4104_v49  ;;  %v1425_v53 = vmul.f32 1.442695, %v4108_v56 }
 0x2fd   : > { %v2417_v45 = vpop.eup %2416  ;;  %v1470_v22 = vmul.f32 %v2415_v31, %v1454_v5  ;;  %2426 = vpow2.f32 %v1437_v6  ;;  %v4112_v31 = vld [vmem:[#allocation19_spill] sm:$0xff] }
 0x2fe   : > { %v2419_v25 = vpop.eup %2418  ;;  %v1471_v62 = vmul.f32 %v2417_v45, %v1455_v43  ;;  %v4113_v45 = vld [vmem:[#allocation21_spill] sm:$0xff]  ;;  %v1452_v43 = vld [vmem:[#allocation4 + $0x38] sm:$0xff] }
 0x2ff   : > { %v1463_v48 = vmul.f32 %v2419_v25, %v1447_v46  ;;  %v2421_v37 = vpop.eup %2420  ;;  %v4114_v38 = vsub.f32 %v4112_v31, %v4113_v45  ;;  %v1451_v46 = vld [vmem:[#allocation4 + $0x30] sm:$0xff] }
 0x300   : > { %v2423_v39 = vpop.eup %2422  ;;  %v1465_v12 = vmul.f32 %v2421_v37, %v1449_v41  ;;  %v1459_v41 = vld [vmem:[#allocation4 + $0x70] sm:$0xff] }
 0x301   : > { %v1464_v52 = vmul.f32 %v2423_v39, %v1448_v28  ;;  %v2425_v55 = vpop.eup %2424  ;;  %v1441_v15 = vmul.f32 1.442695, %v4114_v38  ;;  %v1458_v39 = vld [vmem:[#allocation4 + $0x68] sm:$0xff] }
 0x302   : > { %v1472_v0 = vmul.f32 %v2425_v55, %v1456_v16  ;;  %v1460_v55 = vld [vmem:[#allocation4 + $0x78] sm:$0xff] }
 0x31d   : > { %v1655_v21 = vpop.xlane.xlu2 %1654 }
 0x31e   : > { %v1701_v36 = vadd.f32 %v1655_v21, %v1461_v17  ;;  %v1423_v17 = vmul.f32 1.442695, %v4102_v23  ;;  %v2427_v21 = vpop.eup %2426 }
 0x320   : > { %1717 = vst.msk [vmem:[#allocation4] sm:$0xff] %vm1300_vm3, %v1701_v36  ;;  %2428 = vpow2.f32 %v1423_v17  ;;  %v1457_v36 = vld [vmem:[#allocation4 + $0x60] sm:$0xff] }
 0x321   : > { %v1473_v8 = vmul.f32 %v2427_v21, %v1457_v36 }
 0x324   : > { %v1679_v7 = vpop.xlane.xlu0 %1678 }
 0x325   : > { %v1709_v26 = vadd.f32 %v1679_v7, %v1469_v2  ;;  %v1427_v2 = vmul.f32 1.442695, %v4105_v57 }
 0x326   : > { %v2429_v27 = vpop.eup %2428 }
 0x327   : > { %1725 = vst.msk [vmem:[#allocation4 + $0x40] sm:$0xff] %vm1300_vm3, %v1709_v26  ;;  %2430 = vpow2.f32 %v1427_v2  ;;  %v1466_v14 = vmul.f32 %v2429_v27, %v1450_v54 }
 0x328   : > { %2432 = vpow2.f32 %v1425_v53 }
 0x32d   : > { %v1658_v20 = vpop.xlane.xlu1 %1657  ;;  %v2431_v5 = vpop.eup %2430 }
 0x32e   : > { %v1702_v33 = vadd.f32 %v1658_v20, %v1462_v63  ;;  %v4109_v63 = vld [vmem:[#allocation18_spill] sm:$0xff]  ;;  %v4110_v20 = vld [vmem:[#allocation20_spill] sm:$0xff]  ;;  %v2433_v25 = vpop.eup %2432 }
 0x330   : > { %1718 = vst.msk [vmem:[#allocation4 + $0x8] sm:$0xff] %vm1300_vm3, %v1702_v33  ;;  %v4111_v33 = vsub.f32 %v4109_v63, %v4110_v20 }
 0x332   : > { %v1439_v44 = vmul.f32 1.442695, %v4111_v33 }
 0x334   : > { %2434 = vpow2.f32 %v1439_v44 }
 0x335   : > { %v1682_v58 = vpop.xlane.xlu2 %1681  ;;  %v1685_v50 = vpop.xlane.xlu1 %1684  ;;  %2436 = vpow2.f32 %v1441_v15 }
 0x336   : > { %v1710_v40 = vadd.f32 %v1682_v58, %v1470_v22  ;;  %v1711_v19 = vadd.f32 %v1685_v50, %v1471_v62  ;;  %v1468_v22 = vmul.f32 %v2431_v5, %v1452_v43  ;;  %v1467_v50 = vmul.f32 %v2433_v25, %v1451_v46 }
 0x337   : > { %v1661_v11 = vpop.xlane.xlu0 %1660 }
 0x338   : > { %1726 = vst.msk [vmem:[#allocation4 + $0x48] sm:$0xff] %vm1300_vm3, %v1710_v40  ;;  %v1703_v35 = vadd.f32 %v1661_v11, %v1463_v48 }
 0x339   : > { %1727 = vst.msk [vmem:[#allocation4 + $0x50] sm:$0xff] %vm1300_vm3, %v1711_v19  ;;  %v4115_v19 = vld [vmem:[#allocation22_spill] sm:$0xff] }
 0x33a   : > { %1719 = vst.msk [vmem:[#allocation4 + $0x10] sm:$0xff] %vm1300_vm3, %v1703_v35  ;;  %v2435_v48 = vpop.eup %2434  ;;  %v4117_v47 = vsub.f32 %v4115_v19, %v4116_v29 }
 0x33b   : > { %v2437_v37 = vpop.eup %2436 }
 0x33c   : > { %v1443_v11 = vmul.f32 1.442695, %v4117_v47  ;;  %v1475_v28 = vmul.f32 %v2437_v37, %v1459_v41 }
 0x33d   : > { %v1667_v61 = vpop.xlane.xlu1 %1666 }
 0x33e   : > { %v1705_v51 = vadd.f32 %v1667_v61, %v1465_v12  ;;  %2438 = vpow2.f32 %v1443_v11  ;;  %v1474_v12 = vmul.f32 %v2435_v48, %v1458_v39 }
 0x33f   : > { %v1664_v60 = vpop.xlane.xlu2 %1663 }
 0x340   : > { %1721 = vst.msk [vmem:[#allocation4 + $0x20] sm:$0xff] %vm1300_vm3, %v1705_v51  ;;  %v1704_v3 = vadd.f32 %v1664_v60, %v1464_v52 }
 0x342   : > { %1720 = vst.msk [vmem:[#allocation4 + $0x18] sm:$0xff] %vm1300_vm3, %v1704_v3 }
 0x344   : > { %v2439_v3 = vpop.eup %2438 }
 0x345   : > { %v1688_v42 = vpop.xlane.xlu0 %1687  ;;  %v1476_v10 = vmul.f32 %v2439_v3, %v1460_v55 }
 0x346   : > { %v1712_v18 = vadd.f32 %v1688_v42, %v1472_v0 }
 0x348   : > { %1728 = vst.msk [vmem:[#allocation4 + $0x58] sm:$0xff] %vm1300_vm3, %v1712_v18 }
 0x34e   : > { %v1691_v7 = vpop.xlane.xlu2 %1690 }
 0x34f   : > { %v1713_v26 = vadd.f32 %v1691_v7, %v1473_v8 }
 0x351   : > { %1729 = vst.msk [vmem:[#allocation4 + $0x60] sm:$0xff] %vm1300_vm3, %v1713_v26 }
 0x355   : > { %v1670_v30 = vpop.xlane.xlu0 %1669 }
 0x356   : > { %v1706_v59 = vadd.f32 %v1670_v30, %v1466_v14 }
 0x358   : > { %1722 = vst.msk [vmem:[#allocation4 + $0x28] sm:$0xff] %vm1300_vm3, %v1706_v59 }
 0x35d   : > { %v1676_v62 = vpop.xlane.xlu1 %1675 }
 0x35e   : > { %v1708_v58 = vadd.f32 %v1676_v62, %v1468_v22 }
 0x35f   : > { %v1673_v40 = vpop.xlane.xlu2 %1672 }
 0x360   : > { %1724 = vst.msk [vmem:[#allocation4 + $0x38] sm:$0xff] %vm1300_vm3, %v1708_v58  ;;  %v1707_v35 = vadd.f32 %v1673_v40, %v1467_v50 }
 0x362   : > { %1723 = vst.msk [vmem:[#allocation4 + $0x30] sm:$0xff] %vm1300_vm3, %v1707_v35 }
 0x365   : > { %v1697_v61 = vpop.xlane.xlu0 %1696  ;;  %v1694_v51 = vpop.xlane.xlu1 %1693 }
 0x366   : > { %v1715_v52 = vadd.f32 %v1697_v61, %v1475_v28  ;;  %v1714_v60 = vadd.f32 %v1694_v51, %v1474_v12 }
 0x368   : > { %1731 = vst.msk [vmem:[#allocation4 + $0x70] sm:$0xff] %vm1300_vm3, %v1715_v52 }
 0x369   : > { %1730 = vst.msk [vmem:[#allocation4 + $0x68] sm:$0xff] %vm1300_vm3, %v1714_v60 }
 0x36d   : > { %1752 = sbr.rel (%p2150_p0) target bundleno = 912 (0x390), region = 52 }
 0x36e   : > { %v1700_v1 = vpop.xlane.xlu2 %1699 }
 0x36f   : > { %v1716_v13 = vadd.f32 %v1700_v1, %v1476_v10 }
 0x371   : > { %1732 = vst.msk [vmem:[#allocation4 + $0x78] sm:$0xff] %vm1300_vm3, %v1716_v13 }
 0x372   : > { %v1769_v6 = vld [vmem:[#allocation4] sm:$0xff]  ;;  %v1770_v16 = vld [vmem:[#allocation4 + $0x8] sm:$0xff]  ;;  %v1771_v0 = vld [vmem:[#allocation4 + $0x10] sm:$0xff] }
 0x373   : > { %2440 = vlog2.f32 %v1769_v6  ;;  %v1772_v42 = vld [vmem:[#allocation4 + $0x18] sm:$0xff]  ;;  %v1773_v18 = vld [vmem:[#allocation4 + $0x20] sm:$0xff]  ;;  %v1774_v24 = vld [vmem:[#allocation4 + $0x28] sm:$0xff] }
 0x374   : > { %2442 = vlog2.f32 %v1770_v16  ;;  %v1775_v32 = vld [vmem:[#allocation4 + $0x30] sm:$0xff]  ;;  %v1753_v17 = vld [vmem:[#allocation3] sm:$0xff]  ;;  %v1776_v21 = vld [vmem:[#allocation4 + $0x38] sm:$0xff] }
 0x375   : > { %2444 = vlog2.f32 %v1771_v0  ;;  %v1754_v9 = vld [vmem:[#allocation3 + $0x8] sm:$0xff]  ;;  %v1777_v49 = vld [vmem:[#allocation4 + $0x40] sm:$0xff]  ;;  %v1755_v26 = vld [vmem:[#allocation3 + $0x10] sm:$0xff] }
 0x376   : > { %2446 = vlog2.f32 %v1772_v42  ;;  %v1833_v2 = vld [vmem:[#allocation5] sm:$0xff]  ;;  %v1778_v27 = vld [vmem:[#allocation4 + $0x48] sm:$0xff]  ;;  %v1756_v54 = vld [vmem:[#allocation3 + $0x18] sm:$0xff] }
 0x377   : > { %2448 = vlog2.f32 %v1773_v18  ;;  %v1834_v56 = vld [vmem:[#allocation5 + $0x8] sm:$0xff]  ;;  %v1779_v14 = vld [vmem:[#allocation4 + $0x50] sm:$0xff]  ;;  %v1757_v44 = vld [vmem:[#allocation3 + $0x20] sm:$0xff] }
 0x378   : > { %2450 = vlog2.f32 %v1774_v24  ;;  %v1835_v20 = vld [vmem:[#allocation5 + $0x10] sm:$0xff]  ;;  %v1780_v59 = vld [vmem:[#allocation4 + $0x58] sm:$0xff]  ;;  %v1758_v43 = vld [vmem:[#allocation3 + $0x28] sm:$0xff] }
 0x379   : > { %v2441_v23 = vpop.eup %2440  ;;  %2452 = vlog2.f32 %v1775_v32  ;;  %v1836_v15 = vld [vmem:[#allocation5 + $0x18] sm:$0xff]  ;;  %v1781_v25 = vld [vmem:[#allocation4 + $0x60] sm:$0xff]  ;;  %v1759_v40 = vld [vmem:[#allocation3 + $0x30] sm:$0xff] }
 0x37a   : > { %v2443_v36 = vpop.eup %2442  ;;  %v1786_v8 = vmul.f32 0.6931472, %v2441_v23  ;;  %2454 = vlog2.f32 %v1776_v21  ;;  %v1837_v58 = vld [vmem:[#allocation5 + $0x20] sm:$0xff]  ;;  %v1782_v48 = vld [vmem:[#allocation4 + $0x68] sm:$0xff]  ;;  %v1760_v37 = vld [vmem:[#allocation3 + $0x38] sm:$0xff] }
 0x37b   : > { %v2445_v57 = vpop.eup %2444  ;;  %v1788_v7 = vmul.f32 0.6931472, %v2443_v36  ;;  %2456 = vlog2.f32 %v1777_v49  ;;  %v1838_v11 = vld [vmem:[#allocation5 + $0x28] sm:$0xff]  ;;  %v1783_v41 = vld [vmem:[#allocation4 + $0x70] sm:$0xff]  ;;  %v1761_v52 = vld [vmem:[#allocation3 + $0x40] sm:$0xff] }
 0x37c   : > { %v2447_v34 = vpop.eup %2446  ;;  %v1817_v4 = vadd.f32 %v1786_v8, %v1753_v17  ;;  %v1790_v53 = vmul.f32 0.6931472, %v2445_v57  ;;  %2458 = vlog2.f32 %v1778_v27  ;;  %v1839_v61 = vld [vmem:[#allocation5 + $0x30] sm:$0xff]  ;;  %v1784_v60 = vld [vmem:[#allocation4 + $0x78] sm:$0xff]  ;;  %v1762_v6 = vld [vmem:[#allocation3 + $0x48] sm:$0xff] }
 0x37d   : > { %v2449_v30 = vpop.eup %2448  ;;  %v1818_v63 = vadd.f32 %v1788_v7, %v1754_v9  ;;  %v1792_v33 = vmul.f32 0.6931472, %v2447_v34  ;;  %2460 = vlog2.f32 %v1779_v14  ;;  %v1840_v1 = vld [vmem:[#allocation5 + $0x38] sm:$0xff]  ;;  %v1841_v18 = vld [vmem:[#allocation5 + $0x40] sm:$0xff]  ;;  %v1763_v32 = vld [vmem:[#allocation3 + $0x50] sm:$0xff] }
 0x37e   : > { %v2451_v31 = vpop.eup %2450  ;;  %v1849_v45 = vsub.f32 %v1817_v4, %v1833_v2  ;;  %v1819_v38 = vadd.f32 %v1790_v53, %v1755_v26  ;;  %v1794_v5 = vmul.f32 0.6931472, %v2449_v30  ;;  %2462 = vlog2.f32 %v1780_v59  ;;  %v1842_v36 = vld [vmem:[#allocation5 + $0x48] sm:$0xff]  ;;  %v1764_v9 = vld [vmem:[#allocation3 + $0x58] sm:$0xff]  ;;  %v1843_v7 = vld [vmem:[#allocation5 + $0x50] sm:$0xff] }
 0x37f   : > { %v2453_v46 = vpop.eup %2452  ;;  %v1850_v22 = vsub.f32 %v1818_v63, %v1834_v56  ;;  %v1820_v62 = vadd.f32 %v1792_v33, %v1756_v54  ;;  %v1796_v50 = vmul.f32 0.6931472, %v2451_v31  ;;  %2464 = vlog2.f32 %v1781_v25  ;;  %v1765_v27 = vld [vmem:[#allocation3 + $0x60] sm:$0xff]  ;;  %v1844_v53 = vld [vmem:[#allocation5 + $0x58] sm:$0xff]  ;;  %v1766_v14 = vld [vmem:[#allocation3 + $0x68] sm:$0xff] }
 0x380   : > { %v2455_v19 = vpop.eup %2454  ;;  %1865 = vst.msk [vmem:[%s4046_s4] sm:$0xff] %vm1300_vm3, %v1849_v45  ;;  %v1851_v29 = vsub.f32 %v1819_v38, %v1835_v20  ;;  %v1821_v47 = vadd.f32 %v1794_v5, %v1757_v44  ;;  %v1798_v35 = vmul.f32 0.6931472, %v2453_v46  ;;  %2466 = vlog2.f32 %v1782_v48  ;;  %v1845_v33 = vld [vmem:[#allocation5 + $0x60] sm:$0xff]  ;;  %v1767_v59 = vld [vmem:[#allocation3 + $0x70] sm:$0xff] }
 0x381   : > { %v2457_v39 = vpop.eup %2456  ;;  %1866 = vst.msk [vmem:[%s4046_s4 + $0x8] sm:$0xff] %vm1300_vm3, %v1850_v22  ;;  %v1852_v28 = vsub.f32 %v1820_v62, %v1836_v15  ;;  %v1822_v12 = vadd.f32 %v1796_v50, %v1758_v43  ;;  %v1800_v51 = vmul.f32 0.6931472, %v2455_v19  ;;  %2468 = vlog2.f32 %v1783_v41  ;;  %v1846_v15 = vld [vmem:[#allocation5 + $0x68] sm:$0xff]  ;;  %v1768_v43 = vld [vmem:[#allocation3 + $0x78] sm:$0xff]  ;;  %v1847_v22 = vld [vmem:[#allocation5 + $0x70] sm:$0xff] }
 0x382   : > { %v2459_v3 = vpop.eup %2458  ;;  %1867 = vst.msk [vmem:[%s4046_s4 + $0x10] sm:$0xff] %vm1300_vm3, %v1851_v29  ;;  %v1853_v55 = vsub.f32 %v1821_v47, %v1837_v58  ;;  %v1823_v10 = vadd.f32 %v1798_v35, %v1759_v40  ;;  %v1802_v13 = vmul.f32 0.6931472, %v2457_v39  ;;  %2470 = vlog2.f32 %v1784_v60  ;;  %v1848_v40 = vld [vmem:[#allocation5 + $0x78] sm:$0xff] }
 0x383   : > { %v2461_v16 = vpop.eup %2460  ;;  %1868 = vst.msk [vmem:[%s4046_s4 + $0x18] sm:$0xff] %vm1300_vm3, %v1852_v28  ;;  %v1854_v0 = vsub.f32 %v1822_v12, %v1838_v11  ;;  %v1824_v42 = vadd.f32 %v1800_v51, %v1760_v37  ;;  %v1804_v24 = vmul.f32 0.6931472, %v2459_v3 }
 0x384   : > { %v2463_v23 = vpop.eup %2462  ;;  %1869 = vst.msk [vmem:[%s4046_s4 + $0x20] sm:$0xff] %vm1300_vm3, %v1853_v55  ;;  %v1855_v17 = vsub.f32 %v1823_v10, %v1839_v61  ;;  %v1825_v21 = vadd.f32 %v1802_v13, %v1761_v52  ;;  %v1806_v8 = vmul.f32 0.6931472, %v2461_v16 }
 0x385   : > { %v2465_v49 = vpop.eup %2464  ;;  %1870 = vst.msk [vmem:[%s4046_s4 + $0x28] sm:$0xff] %vm1300_vm3, %v1854_v0  ;;  %v1856_v57 = vsub.f32 %v1824_v42, %v1840_v1  ;;  %v1826_v2 = vadd.f32 %v1804_v24, %v1762_v6  ;;  %v1808_v26 = vmul.f32 0.6931472, %v2463_v23 }
 0x386   : > { %v2467_v34 = vpop.eup %2466  ;;  %1871 = vst.msk [vmem:[%s4046_s4 + $0x30] sm:$0xff] %vm1300_vm3, %v1855_v17  ;;  %v1857_v4 = vsub.f32 %v1825_v21, %v1841_v18  ;;  %v1827_v56 = vadd.f32 %v1806_v8, %v1763_v32  ;;  %v1810_v54 = vmul.f32 0.6931472, %v2465_v49 }
 0x387   : > { %v2469_v30 = vpop.eup %2468  ;;  %1872 = vst.msk [vmem:[%s4046_s4 + $0x38] sm:$0xff] %vm1300_vm3, %v1856_v57  ;;  %v1858_v63 = vsub.f32 %v1826_v2, %v1842_v36  ;;  %v1828_v20 = vadd.f32 %v1808_v26, %v1764_v9  ;;  %v1812_v44 = vmul.f32 0.6931472, %v2467_v34 }
 0x388   : > { %v2471_v31 = vpop.eup %2470  ;;  %1873 = vst.msk [vmem:[%s4046_s4 + $0x40] sm:$0xff] %vm1300_vm3, %v1857_v4  ;;  %v1859_v45 = vsub.f32 %v1827_v56, %v1843_v7  ;;  %v1829_v38 = vadd.f32 %v1810_v54, %v1765_v27  ;;  %v1814_v5 = vmul.f32 0.6931472, %v2469_v30 }
 0x389   : > { %1874 = vst.msk [vmem:[%s4046_s4 + $0x48] sm:$0xff] %vm1300_vm3, %v1858_v63  ;;  %v1860_v25 = vsub.f32 %v1828_v20, %v1844_v53  ;;  %v1830_v46 = vadd.f32 %v1812_v44, %v1766_v14  ;;  %v1816_v62 = vmul.f32 0.6931472, %v2471_v31 }
 0x38a   : > { %1875 = vst.msk [vmem:[%s4046_s4 + $0x50] sm:$0xff] %vm1300_vm3, %v1859_v45  ;;  %v1861_v58 = vsub.f32 %v1829_v38, %v1845_v33  ;;  %v1831_v50 = vadd.f32 %v1814_v5, %v1767_v59 }
 0x38b   : > { %1876 = vst.msk [vmem:[%s4046_s4 + $0x58] sm:$0xff] %vm1300_vm3, %v1860_v25  ;;  %v1862_v48 = vsub.f32 %v1830_v46, %v1846_v15  ;;  %v1832_v19 = vadd.f32 %v1816_v62, %v1768_v43 }
 0x38c   : > { %1877 = vst.msk [vmem:[%s4046_s4 + $0x60] sm:$0xff] %vm1300_vm3, %v1861_v58  ;;  %v1863_v29 = vsub.f32 %v1831_v50, %v1847_v22 }
 0x38d   : > { %1878 = vst.msk [vmem:[%s4046_s4 + $0x68] sm:$0xff] %vm1300_vm3, %v1862_v48  ;;  %v1864_v47 = vsub.f32 %v1832_v19, %v1848_v40 }
 0x38e   : > { %1879 = vst.msk [vmem:[%s4046_s4 + $0x70] sm:$0xff] %vm1300_vm3, %v1863_v29 }
 0x38f   : > { %1880 = vst.msk [vmem:[%s4046_s4 + $0x78] sm:$0xff] %vm1300_vm3, %v1864_v47 }
 0x390 PF: > { %s20_s20 = sadd.s32 1, %s2586_s20   ;;  %s4118_s15 = smov %s2570_s16 }
 0x391   : > { %p17_p1 = scmp.ge.s32.totalorder %s20_s20, 4   ;;  %s4119_s16 = smov %s2574_s17 }
 0x392   : > { %s4120_s17 = smov %s2668_s27  ;;  %s4121_s18 = smov %s2582_s19 }
 0x393   : > { %s4122_s19 = smov %s4124_s22  ;;  %19 = sbr.rel (!%p17_p1) target bundleno = 6 (0x6), region = 103 }
 0x398   :  { %1903 = vsyncpa [#allocation7], 1 }
 0x399   :  { %1905 = vsyncpa [#allocation7 + $0x1], 1 }
 0x39a   :  { %1906 = vsyncpa [#allocation9], 1 }
 0x39b   :  { %1908 = vsyncpa [#allocation9 + $0x1], 1 }

</bundles_post_ra>
